<compile_context>
chip_gen: v7x
topology: tpu7x:2x2x1
jax: 0.10.0
libtpu: 0.0.40
codegen_flags: <defaults>
</compile_context>

<pallas_src>
import jax
import jax.numpy as jnp
from jax.experimental import pallas as pl
from jax.experimental.pallas import tpu as pltpu

HIDDEN = 64     # stand-in for hidden_dim=768 (small shape for the demo)
SEQ = 16        # token sequence length
MAX_WORDS = 8   # max_words implied by word_ids below
BATCH = 2
VOCAB = 100


def entity_matrix_kernel(wid_ref, tok_ref,
                         w1_ref, b1f_ref, w2f_ref, b2f_ref, vf_ref,
                         b1b_ref, w2b_ref, b2b_ref, vb_ref,
                         out_ref, h_ref):
    _, W, H = h_ref.shape          # h_ref: (4, W, H) scratch
    _, TI, TJ = out_ref.shape      # out block: (1, TI, TJ)
    S = wid_ref.shape[2]

    ti = pl.program_id(1)
    tj = pl.program_id(2)

    # ---- once per batch element: word pooling + fused first-layer matmul ----
    @pl.when(jnp.logical_and(ti == 0, tj == 0))
    def _():
        wid = wid_ref[0]                                              # (1, S) int32
        iota_w = jax.lax.broadcasted_iota(jnp.int32, (W, S), 0)
        onehot = (wid == iota_w).astype(jnp.float32)                  # (W, S)
        counts = jnp.sum(onehot, axis=1, keepdims=True)               # (W, 1)
        we = jnp.dot(onehot, tok_ref[0], preferred_element_type=jnp.float32)
        we = we / jnp.maximum(counts, 1.0)                            # (W, H) f32
        # single fused (W,H)@(H,4H) matmul: [W1f_i | W1f_j | W1b_i | W1b_j]
        h_all = jnp.dot(we.astype(jnp.bfloat16), w1_ref[...],
                        preferred_element_type=jnp.float32)           # (W, 4H) f32
        h_ref[0] = h_all[:, 0 * H:1 * H]   # forward,  i-embedding part
        h_ref[1] = h_all[:, 1 * H:2 * H]   # forward,  j-embedding part
        h_ref[2] = h_all[:, 2 * H:3 * H]   # backward, i-embedding part
        h_ref[3] = h_all[:, 3 * H:4 * H]   # backward, j-embedding part

    i0 = pl.multiple_of(ti * TI, TI)
    j0 = pl.multiple_of(tj * TJ, TJ)

    def mlp_tile(i_slot, j_slot, b1_ref, w2_ref, b2_ref, v_ref):
        hi = h_ref[i_slot, pl.ds(i0, TI), :]                           # (TI, H)
        hj = h_ref[j_slot, pl.ds(j0, TJ), :]                           # (TJ, H)
        # first layer epilogue in f32
        h1 = jnp.maximum(hi[:, None, :] + hj[None, :, :] + b1_ref[...][None], 0.0)
        # second layer: ONE flat (TI*TJ, H) @ (H, H) MXU matmul, bf16 in / f32 acc
        h1_2d = h1.reshape(TI * TJ, H).astype(jnp.bfloat16)
        h2 = jnp.dot(h1_2d, w2_ref[...],
                     preferred_element_type=jnp.float32) + b2_ref[...]
        h2 = jnp.maximum(h2, 0.0).reshape(TI, TJ, H)                   # f32
        return jnp.sum(h2 * v_ref[...][None], axis=-1)                 # (TI, TJ)

    # triangular tile skipping: diag (col >= row) belongs to the forward MLP
    full_upper = j0 >= i0 + (TI - 1)     # whole tile satisfies col >= row
    full_lower = (j0 + TJ) <= i0         # whole tile satisfies col <  row

    @pl.when(full_upper)
    def _():
        out_ref[0] = mlp_tile(0, 1, b1f_ref, w2f_ref, b2f_ref, vf_ref)

    @pl.when(full_lower)
    def _():
        out_ref[0] = mlp_tile(2, 3, b1b_ref, w2b_ref, b2b_ref, vb_ref)

    @pl.when(jnp.logical_and(jnp.logical_not(full_upper),
                             jnp.logical_not(full_lower)))
    def _():
        lf = mlp_tile(0, 1, b1f_ref, w2f_ref, b2f_ref, vf_ref)
        lb = mlp_tile(2, 3, b1b_ref, w2b_ref, b2b_ref, vb_ref)
        row = i0 + jax.lax.broadcasted_iota(jnp.int32, (TI, TJ), 0)
        col = j0 + jax.lax.broadcasted_iota(jnp.int32, (TI, TJ), 1)
        out_ref[0] = jnp.where(col >= row, lf, lb)


def entity_matrix_predictor(token_emb, word_ids, params, max_words,
                            *, tile_i=None, tile_j=None):
    """token_emb: (B, S, H) f32; word_ids: (B, S) int32 (-1 == None)."""
    B, S, H = token_emb.shape
    W = max_words
    TI = tile_i if tile_i is not None else W
    TJ = tile_j if tile_j is not None else W
    assert W % TI == 0 and W % TJ == 0
    NI, NJ = W // TI, W // TJ

    # Fused first-layer weight [W1f_i | W1f_j | W1b_i | W1b_j] -> (H, 4H),
    # bf16 for the MXU. Biases / v stay f32 (f32 epilogue).
    w1cat = jnp.concatenate(
        [params['w1f'][:H], params['w1f'][H:],
         params['w1b'][:H], params['w1b'][H:]], axis=1).astype(jnp.bfloat16)
    w2f = params['w2f'].astype(jnp.bfloat16)
    w2b = params['w2b'].astype(jnp.bfloat16)
    b1f = params['b1f'][None, :]
    b2f = params['b2f'][None, :]
    vf = params['vf'][None, :]
    b1b = params['b1b'][None, :]
    b2b = params['b2b'][None, :]
    vb = params['vb'][None, :]

    wid = word_ids.astype(jnp.int32)[:, None, :]   # (B, 1, S)

    def const2d(x):
        # weights: constant block index -> resident across the whole grid
        return pl.BlockSpec(x.shape, lambda b, i, j: (0, 0))

    in_specs = [
        pl.BlockSpec((1, 1, S), lambda b, i, j: (b, 0, 0)),   # word ids
        pl.BlockSpec((1, S, H), lambda b, i, j: (b, 0, 0)),   # token embeddings
        const2d(w1cat), const2d(b1f), const2d(w2f), const2d(b2f), const2d(vf),
        const2d(b1b), const2d(w2b), const2d(b2b), const2d(vb),
    ]

    return pl.pallas_call(
        entity_matrix_kernel,
        out_shape=jax.ShapeDtypeStruct((B, W, W), jnp.float32),
        grid=(B, NI, NJ),
        in_specs=in_specs,
        out_specs=pl.BlockSpec((1, TI, TJ), lambda b, i, j: (b, i, j)),
        scratch_shapes=[pltpu.VMEM((4, W, H), jnp.float32)],
        compiler_params=pltpu.CompilerParams(
            dimension_semantics=("parallel", "arbitrary", "arbitrary")),
    )(wid, token_emb, w1cat, b1f, w2f, b2f, vf, b1b, w2b, b2b, vb)


def reference(token_emb, word_ids, params, max_words):
    """Pure-JAX f32 reference mirroring the PyTorch forward (post-BERT)."""
    B, S, H = token_emb.shape
    W = max_words
    onehot = (word_ids[:, None, :] == jnp.arange(W)[None, :, None]).astype(jnp.float32)
    counts = onehot.sum(-1, keepdims=True)
    we = jnp.einsum('bws,bsh->bwh', onehot, token_emb) / jnp.maximum(counts, 1.0)
    i_emb = jnp.broadcast_to(we[:, :, None, :], (B, W, W, H))
    j_emb = jnp.broadcast_to(we[:, None, :, :], (B, W, W, H))
    pair = jnp.concatenate([i_emb, j_emb], axis=-1)

    def mlp(x, w1, b1, w2, b2, v):
        h = jax.nn.relu(x @ w1 + b1)
        h = jax.nn.relu(h @ w2 + b2)
        return h @ v

    lf = mlp(pair, params['w1f'], params['b1f'], params['w2f'], params['b2f'], params['vf'])
    lb = mlp(pair, params['w1b'], params['b1b'], params['w2b'], params['b2b'], params['vb'])
    row = jnp.arange(W)[:, None]
    col = jnp.arange(W)[None, :]
    return jnp.where(col >= row, lf, lb)


if __name__ == "__main__":
    key = jax.random.PRNGKey(0)
    keys = jax.random.split(key, 12)

    H = HIDDEN
    params = {
        'w1f': jax.random.normal(keys[0], (2 * H, H), jnp.float32) * 0.1,
        'b1f': jax.random.normal(keys[1], (H,), jnp.float32) * 0.1,
        'w2f': jax.random.normal(keys[2], (H, H), jnp.float32) * 0.1,
        'b2f': jax.random.normal(keys[3], (H,), jnp.float32) * 0.1,
        'vf':  jax.random.normal(keys[4], (H,), jnp.float32),
        'w1b': jax.random.normal(keys[5], (2 * H, H), jnp.float32) * 0.1,
        'b1b': jax.random.normal(keys[6], (H,), jnp.float32) * 0.1,
        'w2b': jax.random.normal(keys[7], (H, H), jnp.float32) * 0.1,
        'b2b': jax.random.normal(keys[8], (H,), jnp.float32) * 0.1,
        'vb':  jax.random.normal(keys[9], (H,), jnp.float32),
    }

    # synthetic inputs matching the module's interface
    input_ids = jax.random.randint(keys[10], (BATCH, SEQ), 0, VOCAB, dtype=jnp.int32)
    attention_mask = jnp.ones((BATCH, SEQ), jnp.int32)  # consumed only by the BERT stand-in
    word_ids = jnp.array(
        [[0, 0, 1, 1, 2, 2, 3, 3, 4, 4, 5, 5, 6, 6, 7, 7],
         [-1, 0, 0, 1, 2, 2, 3, 3, 4, 5, 5, 6, 6, 7, 7, -1]], dtype=jnp.int32)
    max_words = MAX_WORDS

    # BERT stand-in: deterministic embedding lookup -> "last_hidden_state"
    emb_table = jax.random.normal(keys[11], (VOCAB, H), jnp.float32)
    token_emb = emb_table[input_ids]

    out = entity_matrix_predictor(token_emb, word_ids, params, max_words)
    out = jax.block_until_ready(out)

    ref = reference(token_emb, word_ids, params, max_words)
    assert out.shape == (BATCH, MAX_WORDS, MAX_WORDS)
    # tolerance accounts for bf16 matmul inputs (f32 accumulation) in the
    # kernel vs. the all-f32 reference
    max_err = float(jnp.max(jnp.abs(out - ref)))
    scale = float(jnp.max(jnp.abs(ref)))
    assert max_err <= 3e-2 * scale + 1e-1, f"max abs err {max_err} (scale {scale})"

    print("KERNEL_OK")
</pallas_src>

<mosaic_0001>
module attributes {stable_mosaic.version = 11 : i64} {
  func.func @entity_matrix_kernel(%arg0: i32, %arg1: i32, %arg2: i32, %arg3: memref<1x1x16xi32, #tpu.memory_space<vmem>>, %arg4: memref<1x16x64xf32, #tpu.memory_space<vmem>>, %arg5: memref<64x256xbf16, #tpu.memory_space<vmem>>, %arg6: memref<1x64xf32, #tpu.memory_space<vmem>>, %arg7: memref<64x64xbf16, #tpu.memory_space<vmem>>, %arg8: memref<1x64xf32, #tpu.memory_space<vmem>>, %arg9: memref<1x64xf32, #tpu.memory_space<vmem>>, %arg10: memref<1x64xf32, #tpu.memory_space<vmem>>, %arg11: memref<64x64xbf16, #tpu.memory_space<vmem>>, %arg12: memref<1x64xf32, #tpu.memory_space<vmem>>, %arg13: memref<1x64xf32, #tpu.memory_space<vmem>>, %arg14: memref<1x8x8xf32, #tpu.memory_space<vmem>>, %arg15: memref<4x8x64xf32, #tpu.memory_space<vmem>>) attributes {dimension_semantics = [#tpu.dimension_semantics<parallel>, #tpu.dimension_semantics<arbitrary>, #tpu.dimension_semantics<arbitrary>], iteration_bounds = array<i64: 2, 1, 1>, scalar_prefetch = 0 : i64, scratch_operands = 1 : i64, tpu.core_type = #tpu.core_type<tc>, window_params = [{transform_indices = @transform_0, window_bounds = array<i64: 1, 1, 16>}, {transform_indices = @transform_1, window_bounds = array<i64: 1, 16, 64>}, {pipeline_mode = #tpu.pipeline_mode<synchronous>, transform_indices = @transform_2, window_bounds = array<i64: 64, 256>}, {pipeline_mode = #tpu.pipeline_mode<synchronous>, transform_indices = @transform_3, window_bounds = array<i64: 1, 64>}, {pipeline_mode = #tpu.pipeline_mode<synchronous>, transform_indices = @transform_4, window_bounds = array<i64: 64, 64>}, {pipeline_mode = #tpu.pipeline_mode<synchronous>, transform_indices = @transform_5, window_bounds = array<i64: 1, 64>}, {pipeline_mode = #tpu.pipeline_mode<synchronous>, transform_indices = @transform_6, window_bounds = array<i64: 1, 64>}, {pipeline_mode = #tpu.pipeline_mode<synchronous>, transform_indices = @transform_7, window_bounds = array<i64: 1, 64>}, {pipeline_mode = #tpu.pipeline_mode<synchronous>, transform_indices = @transform_8, window_bounds = array<i64: 64, 64>}, {pipeline_mode = #tpu.pipeline_mode<synchronous>, transform_indices = @transform_9, window_bounds = array<i64: 1, 64>}, {pipeline_mode = #tpu.pipeline_mode<synchronous>, transform_indices = @transform_10, window_bounds = array<i64: 1, 64>}, {transform_indices = @transform_11, window_bounds = array<i64: 1, 8, 8>}]} {
    %c0_i32 = arith.constant 0 : i32
    %0 = arith.cmpi eq, %arg1, %c0_i32 : i32
    %c0_i32_0 = arith.constant 0 : i32
    %1 = arith.cmpi eq, %arg2, %c0_i32_0 : i32
    %2 = arith.andi %0, %1 : i1
    %3 = arith.extui %2 : i1 to i32
    %c0_i32_1 = arith.constant 0 : i32
    %4 = arith.cmpi ne, %3, %c0_i32_1 : i32
    scf.if %4 {
      %c0 = arith.constant 0 : index
      %c0_8 = arith.constant 0 : index
      %c0_9 = arith.constant 0 : index
      %22 = vector.load %arg3[%c0, %c0_8, %c0_9] : memref<1x1x16xi32, #tpu.memory_space<vmem>>, vector<1x1x16xi32>
      %23 = vector.shape_cast %22 : vector<1x1x16xi32> to vector<1x16xi32>
      %24 = tpu.iota {dimensions = array<i32: 0>} : vector<8x16xi32>
      %25 = vector.broadcast %23 : vector<1x16xi32> to vector<8x16xi32>
      %26 = arith.cmpi eq, %25, %24 : vector<8x16xi32>
      %27 = arith.extui %26 : vector<8x16xi1> to vector<8x16xi32>
      %28 = arith.sitofp %27 : vector<8x16xi32> to vector<8x16xf32>
      %cst = arith.constant dense<0.000000e+00> : vector<8xf32>
      %29 = vector.multi_reduction <add>, %28, %cst [1] : vector<8x16xf32> to vector<8xf32>
      %30 = vector.shape_cast %29 : vector<8xf32> to vector<8x1xf32>
      %c0_10 = arith.constant 0 : index
      %c0_11 = arith.constant 0 : index
      %c0_12 = arith.constant 0 : index
      %31 = vector.load %arg4[%c0_10, %c0_11, %c0_12] : memref<1x16x64xf32, #tpu.memory_space<vmem>>, vector<1x16x64xf32>
      %32 = vector.shape_cast %31 : vector<1x16x64xf32> to vector<16x64xf32>
      %cst_13 = arith.constant dense<0.000000e+00> : vector<8x64xf32>
      %33 = tpu.matmul %28, %32, %cst_13 {dimension_numbers = #tpu.dot_dimension_numbers<[1], [0], [0], [1], [0, 0, 1, 1], [], []>} : vector<8x16xf32>, vector<16x64xf32>, vector<8x64xf32> -> vector<8x64xf32>
      %cst_14 = arith.constant 1.000000e+00 : f32
      %34 = vector.broadcast %cst_14 : f32 to vector<8x1xf32>
      %35 = arith.maximumf %30, %34 : vector<8x1xf32>
      %36 = vector.broadcast %35 : vector<8x1xf32> to vector<8x64xf32>
      %37 = arith.divf %33, %36 : vector<8x64xf32>
      %38 = arith.truncf %37 : vector<8x64xf32> to vector<8x64xbf16>
      %c0_15 = arith.constant 0 : index
      %c0_16 = arith.constant 0 : index
      %39 = vector.load %arg5[%c0_15, %c0_16] : memref<64x256xbf16, #tpu.memory_space<vmem>>, vector<64x256xbf16>
      %cst_17 = arith.constant dense<0.000000e+00> : vector<8x256xf32>
      %40 = tpu.matmul %38, %39, %cst_17 {dimension_numbers = #tpu.dot_dimension_numbers<[1], [0], [0], [1], [0, 0, 1, 1], [], []>} : vector<8x64xbf16>, vector<64x256xbf16>, vector<8x256xf32> -> vector<8x256xf32>
      %41 = vector.extract_strided_slice %40 {offsets = [0, 0], sizes = [8, 64], strides = [1, 1]} : vector<8x256xf32> to vector<8x64xf32>
      %c0_18 = arith.constant 0 : index
      %c0_19 = arith.constant 0 : index
      %c0_20 = arith.constant 0 : index
      %42 = vector.load %arg15[%c0_18, %c0_19, %c0_20] : memref<4x8x64xf32, #tpu.memory_space<vmem>>, vector<1x8x64xf32>
      %43 = vector.shape_cast %42 : vector<1x8x64xf32> to vector<8x64xf32>
      %44 = vector.shape_cast %41 : vector<8x64xf32> to vector<1x8x64xf32>
      tpu.vector_store %arg15[%c0_18, %c0_19, %c0_20], %44 {strides = array<i32>} : memref<4x8x64xf32, #tpu.memory_space<vmem>>, vector<1x8x64xf32>,
      %45 = vector.extract_strided_slice %40 {offsets = [0, 64], sizes = [8, 64], strides = [1, 1]} : vector<8x256xf32> to vector<8x64xf32>
      %c1 = arith.constant 1 : index
      %c0_21 = arith.constant 0 : index
      %c0_22 = arith.constant 0 : index
      %46 = vector.load %arg15[%c1, %c0_21, %c0_22] : memref<4x8x64xf32, #tpu.memory_space<vmem>>, vector<1x8x64xf32>
      %47 = vector.shape_cast %46 : vector<1x8x64xf32> to vector<8x64xf32>
      %48 = vector.shape_cast %45 : vector<8x64xf32> to vector<1x8x64xf32>
      tpu.vector_store %arg15[%c1, %c0_21, %c0_22], %48 {strides = array<i32>} : memref<4x8x64xf32, #tpu.memory_space<vmem>>, vector<1x8x64xf32>,
      %49 = vector.extract_strided_slice %40 {offsets = [0, 128], sizes = [8, 64], strides = [1, 1]} : vector<8x256xf32> to vector<8x64xf32>
      %c2 = arith.constant 2 : index
      %c0_23 = arith.constant 0 : index
      %c0_24 = arith.constant 0 : index
      %50 = vector.load %arg15[%c2, %c0_23, %c0_24] : memref<4x8x64xf32, #tpu.memory_space<vmem>>, vector<1x8x64xf32>
      %51 = vector.shape_cast %50 : vector<1x8x64xf32> to vector<8x64xf32>
      %52 = vector.shape_cast %49 : vector<8x64xf32> to vector<1x8x64xf32>
      tpu.vector_store %arg15[%c2, %c0_23, %c0_24], %52 {strides = array<i32>} : memref<4x8x64xf32, #tpu.memory_space<vmem>>, vector<1x8x64xf32>,
      %53 = vector.extract_strided_slice %40 {offsets = [0, 192], sizes = [8, 64], strides = [1, 1]} : vector<8x256xf32> to vector<8x64xf32>
      %c3 = arith.constant 3 : index
      %c0_25 = arith.constant 0 : index
      %c0_26 = arith.constant 0 : index
      %54 = vector.load %arg15[%c3, %c0_25, %c0_26] : memref<4x8x64xf32, #tpu.memory_space<vmem>>, vector<1x8x64xf32>
      %55 = vector.shape_cast %54 : vector<1x8x64xf32> to vector<8x64xf32>
      %56 = vector.shape_cast %53 : vector<8x64xf32> to vector<1x8x64xf32>
      tpu.vector_store %arg15[%c3, %c0_25, %c0_26], %56 {strides = array<i32>} : memref<4x8x64xf32, #tpu.memory_space<vmem>>, vector<1x8x64xf32>,
    } else {
    }
    %c8_i32 = arith.constant 8 : i32
    %5 = arith.muli %arg1, %c8_i32 : i32
    %6 = tpu.assume_multiple %5, 8 : i32
    %c8_i32_2 = arith.constant 8 : i32
    %7 = arith.muli %arg2, %c8_i32_2 : i32
    %8 = tpu.assume_multiple %7, 8 : i32
    %c7_i32 = arith.constant 7 : i32
    %9 = arith.addi %6, %c7_i32 : i32
    %10 = arith.cmpi sge, %8, %9 : i32
    %c8_i32_3 = arith.constant 8 : i32
    %11 = arith.addi %8, %c8_i32_3 : i32
    %12 = arith.cmpi sle, %11, %6 : i32
    %13 = arith.extui %10 : i1 to i32
    %c0_i32_4 = arith.constant 0 : i32
    %14 = arith.cmpi ne, %13, %c0_i32_4 : i32
    scf.if %14 {
      %c0 = arith.constant 0 : index
      %22 = arith.index_cast %6 : i32 to index
      %c0_8 = arith.constant 0 : index
      %23 = vector.load %arg15[%c0, %22, %c0_8] : memref<4x8x64xf32, #tpu.memory_space<vmem>>, vector<1x8x64xf32>
      %24 = vector.shape_cast %23 : vector<1x8x64xf32> to vector<8x64xf32>
      %c1 = arith.constant 1 : index
      %25 = arith.index_cast %8 : i32 to index
      %c0_9 = arith.constant 0 : index
      %26 = vector.load %arg15[%c1, %25, %c0_9] : memref<4x8x64xf32, #tpu.memory_space<vmem>>, vector<1x8x64xf32>
      %27 = vector.shape_cast %26 : vector<1x8x64xf32> to vector<8x64xf32>
      %28 = vector.shape_cast %24 : vector<8x64xf32> to vector<8x1x64xf32>
      %29 = vector.shape_cast %27 : vector<8x64xf32> to vector<1x8x64xf32>
      %30 = vector.broadcast %28 : vector<8x1x64xf32> to vector<8x8x64xf32>
      %31 = vector.broadcast %29 : vector<1x8x64xf32> to vector<8x8x64xf32>
      %32 = arith.addf %30, %31 : vector<8x8x64xf32>
      %c0_10 = arith.constant 0 : index
      %c0_11 = arith.constant 0 : index
      %33 = vector.load %arg6[%c0_10, %c0_11] : memref<1x64xf32, #tpu.memory_space<vmem>>, vector<1x64xf32>
      %34 = vector.shape_cast %33 : vector<1x64xf32> to vector<1x1x64xf32>
      %35 = vector.broadcast %34 : vector<1x1x64xf32> to vector<8x8x64xf32>
      %36 = arith.addf %32, %35 : vector<8x8x64xf32>
      %cst = arith.constant 0.000000e+00 : f32
      %37 = vector.broadcast %cst : f32 to vector<8x8x64xf32>
      %38 = arith.maximumf %36, %37 : vector<8x8x64xf32>
      %39 = vector.shape_cast %38 : vector<8x8x64xf32> to vector<64x64xf32>
      %40 = arith.truncf %39 : vector<64x64xf32> to vector<64x64xbf16>
      %c0_12 = arith.constant 0 : index
      %c0_13 = arith.constant 0 : index
      %41 = vector.load %arg7[%c0_12, %c0_13] : memref<64x64xbf16, #tpu.memory_space<vmem>>, vector<64x64xbf16>
      %cst_14 = arith.constant dense<0.000000e+00> : vector<64x64xf32>
      %42 = tpu.matmul %40, %41, %cst_14 {dimension_numbers = #tpu.dot_dimension_numbers<[1], [0], [0], [1], [0, 0, 1, 1], [], []>} : vector<64x64xbf16>, vector<64x64xbf16>, vector<64x64xf32> -> vector<64x64xf32>
      %c0_15 = arith.constant 0 : index
      %c0_16 = arith.constant 0 : index
      %43 = vector.load %arg8[%c0_15, %c0_16] : memref<1x64xf32, #tpu.memory_space<vmem>>, vector<1x64xf32>
      %44 = vector.broadcast %43 : vector<1x64xf32> to vector<64x64xf32>
      %45 = arith.addf %42, %44 : vector<64x64xf32>
      %cst_17 = arith.constant 0.000000e+00 : f32
      %46 = vector.broadcast %cst_17 : f32 to vector<64x64xf32>
      %47 = arith.maximumf %45, %46 : vector<64x64xf32>
      %48 = vector.shape_cast %47 : vector<64x64xf32> to vector<8x8x64xf32>
      %c0_18 = arith.constant 0 : index
      %c0_19 = arith.constant 0 : index
      %49 = vector.load %arg9[%c0_18, %c0_19] : memref<1x64xf32, #tpu.memory_space<vmem>>, vector<1x64xf32>
      %50 = vector.shape_cast %49 : vector<1x64xf32> to vector<1x1x64xf32>
      %51 = vector.broadcast %50 : vector<1x1x64xf32> to vector<8x8x64xf32>
      %52 = arith.mulf %48, %51 : vector<8x8x64xf32>
      %cst_20 = arith.constant dense<0.000000e+00> : vector<8x8xf32>
      %53 = vector.multi_reduction <add>, %52, %cst_20 [2] : vector<8x8x64xf32> to vector<8x8xf32>
      %c0_21 = arith.constant 0 : index
      %c0_22 = arith.constant 0 : index
      %c0_23 = arith.constant 0 : index
      %54 = vector.load %arg14[%c0_21, %c0_22, %c0_23] : memref<1x8x8xf32, #tpu.memory_space<vmem>>, vector<1x8x8xf32>
      %55 = vector.shape_cast %54 : vector<1x8x8xf32> to vector<8x8xf32>
      %56 = vector.shape_cast %53 : vector<8x8xf32> to vector<1x8x8xf32>
      tpu.vector_store %arg14[%c0_21, %c0_22, %c0_23], %56 {strides = array<i32>} : memref<1x8x8xf32, #tpu.memory_space<vmem>>, vector<1x8x8xf32>,
    } else {
    }
    %15 = arith.extui %12 : i1 to i32
    %c0_i32_5 = arith.constant 0 : i32
    %16 = arith.cmpi ne, %15, %c0_i32_5 : i32
    scf.if %16 {
      %c2 = arith.constant 2 : index
      %22 = arith.index_cast %6 : i32 to index
      %c0 = arith.constant 0 : index
      %23 = vector.load %arg15[%c2, %22, %c0] : memref<4x8x64xf32, #tpu.memory_space<vmem>>, vector<1x8x64xf32>
      %24 = vector.shape_cast %23 : vector<1x8x64xf32> to vector<8x64xf32>
      %c3 = arith.constant 3 : index
      %25 = arith.index_cast %8 : i32 to index
      %c0_8 = arith.constant 0 : index
      %26 = vector.load %arg15[%c3, %25, %c0_8] : memref<4x8x64xf32, #tpu.memory_space<vmem>>, vector<1x8x64xf32>
      %27 = vector.shape_cast %26 : vector<1x8x64xf32> to vector<8x64xf32>
      %28 = vector.shape_cast %24 : vector<8x64xf32> to vector<8x1x64xf32>
      %29 = vector.shape_cast %27 : vector<8x64xf32> to vector<1x8x64xf32>
      %30 = vector.broadcast %28 : vector<8x1x64xf32> to vector<8x8x64xf32>
      %31 = vector.broadcast %29 : vector<1x8x64xf32> to vector<8x8x64xf32>
      %32 = arith.addf %30, %31 : vector<8x8x64xf32>
      %c0_9 = arith.constant 0 : index
      %c0_10 = arith.constant 0 : index
      %33 = vector.load %arg10[%c0_9, %c0_10] : memref<1x64xf32, #tpu.memory_space<vmem>>, vector<1x64xf32>
      %34 = vector.shape_cast %33 : vector<1x64xf32> to vector<1x1x64xf32>
      %35 = vector.broadcast %34 : vector<1x1x64xf32> to vector<8x8x64xf32>
      %36 = arith.addf %32, %35 : vector<8x8x64xf32>
      %cst = arith.constant 0.000000e+00 : f32
      %37 = vector.broadcast %cst : f32 to vector<8x8x64xf32>
      %38 = arith.maximumf %36, %37 : vector<8x8x64xf32>
      %39 = vector.shape_cast %38 : vector<8x8x64xf32> to vector<64x64xf32>
      %40 = arith.truncf %39 : vector<64x64xf32> to vector<64x64xbf16>
      %c0_11 = arith.constant 0 : index
      %c0_12 = arith.constant 0 : index
      %41 = vector.load %arg11[%c0_11, %c0_12] : memref<64x64xbf16, #tpu.memory_space<vmem>>, vector<64x64xbf16>
      %cst_13 = arith.constant dense<0.000000e+00> : vector<64x64xf32>
      %42 = tpu.matmul %40, %41, %cst_13 {dimension_numbers = #tpu.dot_dimension_numbers<[1], [0], [0], [1], [0, 0, 1, 1], [], []>} : vector<64x64xbf16>, vector<64x64xbf16>, vector<64x64xf32> -> vector<64x64xf32>
      %c0_14 = arith.constant 0 : index
      %c0_15 = arith.constant 0 : index
      %43 = vector.load %arg12[%c0_14, %c0_15] : memref<1x64xf32, #tpu.memory_space<vmem>>, vector<1x64xf32>
      %44 = vector.broadcast %43 : vector<1x64xf32> to vector<64x64xf32>
      %45 = arith.addf %42, %44 : vector<64x64xf32>
      %cst_16 = arith.constant 0.000000e+00 : f32
      %46 = vector.broadcast %cst_16 : f32 to vector<64x64xf32>
      %47 = arith.maximumf %45, %46 : vector<64x64xf32>
      %48 = vector.shape_cast %47 : vector<64x64xf32> to vector<8x8x64xf32>
      %c0_17 = arith.constant 0 : index
      %c0_18 = arith.constant 0 : index
      %49 = vector.load %arg13[%c0_17, %c0_18] : memref<1x64xf32, #tpu.memory_space<vmem>>, vector<1x64xf32>
      %50 = vector.shape_cast %49 : vector<1x64xf32> to vector<1x1x64xf32>
      %51 = vector.broadcast %50 : vector<1x1x64xf32> to vector<8x8x64xf32>
      %52 = arith.mulf %48, %51 : vector<8x8x64xf32>
      %cst_19 = arith.constant dense<0.000000e+00> : vector<8x8xf32>
      %53 = vector.multi_reduction <add>, %52, %cst_19 [2] : vector<8x8x64xf32> to vector<8x8xf32>
      %c0_20 = arith.constant 0 : index
      %c0_21 = arith.constant 0 : index
      %c0_22 = arith.constant 0 : index
      %54 = vector.load %arg14[%c0_20, %c0_21, %c0_22] : memref<1x8x8xf32, #tpu.memory_space<vmem>>, vector<1x8x8xf32>
      %55 = vector.shape_cast %54 : vector<1x8x8xf32> to vector<8x8xf32>
      %56 = vector.shape_cast %53 : vector<8x8xf32> to vector<1x8x8xf32>
      tpu.vector_store %arg14[%c0_20, %c0_21, %c0_22], %56 {strides = array<i32>} : memref<1x8x8xf32, #tpu.memory_space<vmem>>, vector<1x8x8xf32>,
    } else {
    }
    %true = arith.constant true
    %17 = arith.xori %10, %true : i1
    %true_6 = arith.constant true
    %18 = arith.xori %12, %true_6 : i1
    %19 = arith.andi %17, %18 : i1
    %20 = arith.extui %19 : i1 to i32
    %c0_i32_7 = arith.constant 0 : i32
    %21 = arith.cmpi ne, %20, %c0_i32_7 : i32
    scf.if %21 {
      %c0 = arith.constant 0 : index
      %22 = arith.index_cast %6 : i32 to index
      %c0_8 = arith.constant 0 : index
      %23 = vector.load %arg15[%c0, %22, %c0_8] : memref<4x8x64xf32, #tpu.memory_space<vmem>>, vector<1x8x64xf32>
      %24 = vector.shape_cast %23 : vector<1x8x64xf32> to vector<8x64xf32>
      %c1 = arith.constant 1 : index
      %25 = arith.index_cast %8 : i32 to index
      %c0_9 = arith.constant 0 : index
      %26 = vector.load %arg15[%c1, %25, %c0_9] : memref<4x8x64xf32, #tpu.memory_space<vmem>>, vector<1x8x64xf32>
      %27 = vector.shape_cast %26 : vector<1x8x64xf32> to vector<8x64xf32>
      %28 = vector.shape_cast %24 : vector<8x64xf32> to vector<8x1x64xf32>
      %29 = vector.shape_cast %27 : vector<8x64xf32> to vector<1x8x64xf32>
      %30 = vector.broadcast %28 : vector<8x1x64xf32> to vector<8x8x64xf32>
      %31 = vector.broadcast %29 : vector<1x8x64xf32> to vector<8x8x64xf32>
      %32 = arith.addf %30, %31 : vector<8x8x64xf32>
      %c0_10 = arith.constant 0 : index
      %c0_11 = arith.constant 0 : index
      %33 = vector.load %arg6[%c0_10, %c0_11] : memref<1x64xf32, #tpu.memory_space<vmem>>, vector<1x64xf32>
      %34 = vector.shape_cast %33 : vector<1x64xf32> to vector<1x1x64xf32>
      %35 = vector.broadcast %34 : vector<1x1x64xf32> to vector<8x8x64xf32>
      %36 = arith.addf %32, %35 : vector<8x8x64xf32>
      %cst = arith.constant 0.000000e+00 : f32
      %37 = vector.broadcast %cst : f32 to vector<8x8x64xf32>
      %38 = arith.maximumf %36, %37 : vector<8x8x64xf32>
      %39 = vector.shape_cast %38 : vector<8x8x64xf32> to vector<64x64xf32>
      %40 = arith.truncf %39 : vector<64x64xf32> to vector<64x64xbf16>
      %c0_12 = arith.constant 0 : index
      %c0_13 = arith.constant 0 : index
      %41 = vector.load %arg7[%c0_12, %c0_13] : memref<64x64xbf16, #tpu.memory_space<vmem>>, vector<64x64xbf16>
      %cst_14 = arith.constant dense<0.000000e+00> : vector<64x64xf32>
      %42 = tpu.matmul %40, %41, %cst_14 {dimension_numbers = #tpu.dot_dimension_numbers<[1], [0], [0], [1], [0, 0, 1, 1], [], []>} : vector<64x64xbf16>, vector<64x64xbf16>, vector<64x64xf32> -> vector<64x64xf32>
      %c0_15 = arith.constant 0 : index
      %c0_16 = arith.constant 0 : index
      %43 = vector.load %arg8[%c0_15, %c0_16] : memref<1x64xf32, #tpu.memory_space<vmem>>, vector<1x64xf32>
      %44 = vector.broadcast %43 : vector<1x64xf32> to vector<64x64xf32>
      %45 = arith.addf %42, %44 : vector<64x64xf32>
      %cst_17 = arith.constant 0.000000e+00 : f32
      %46 = vector.broadcast %cst_17 : f32 to vector<64x64xf32>
      %47 = arith.maximumf %45, %46 : vector<64x64xf32>
      %48 = vector.shape_cast %47 : vector<64x64xf32> to vector<8x8x64xf32>
      %c0_18 = arith.constant 0 : index
      %c0_19 = arith.constant 0 : index
      %49 = vector.load %arg9[%c0_18, %c0_19] : memref<1x64xf32, #tpu.memory_space<vmem>>, vector<1x64xf32>
      %50 = vector.shape_cast %49 : vector<1x64xf32> to vector<1x1x64xf32>
      %51 = vector.broadcast %50 : vector<1x1x64xf32> to vector<8x8x64xf32>
      %52 = arith.mulf %48, %51 : vector<8x8x64xf32>
      %cst_20 = arith.constant dense<0.000000e+00> : vector<8x8xf32>
      %53 = vector.multi_reduction <add>, %52, %cst_20 [2] : vector<8x8x64xf32> to vector<8x8xf32>
      %c2 = arith.constant 2 : index
      %54 = arith.index_cast %6 : i32 to index
      %c0_21 = arith.constant 0 : index
      %55 = vector.load %arg15[%c2, %54, %c0_21] : memref<4x8x64xf32, #tpu.memory_space<vmem>>, vector<1x8x64xf32>
      %56 = vector.shape_cast %55 : vector<1x8x64xf32> to vector<8x64xf32>
      %c3 = arith.constant 3 : index
      %57 = arith.index_cast %8 : i32 to index
      %c0_22 = arith.constant 0 : index
      %58 = vector.load %arg15[%c3, %57, %c0_22] : memref<4x8x64xf32, #tpu.memory_space<vmem>>, vector<1x8x64xf32>
      %59 = vector.shape_cast %58 : vector<1x8x64xf32> to vector<8x64xf32>
      %60 = vector.shape_cast %56 : vector<8x64xf32> to vector<8x1x64xf32>
      %61 = vector.shape_cast %59 : vector<8x64xf32> to vector<1x8x64xf32>
      %62 = vector.broadcast %60 : vector<8x1x64xf32> to vector<8x8x64xf32>
      %63 = vector.broadcast %61 : vector<1x8x64xf32> to vector<8x8x64xf32>
      %64 = arith.addf %62, %63 : vector<8x8x64xf32>
      %c0_23 = arith.constant 0 : index
      %c0_24 = arith.constant 0 : index
      %65 = vector.load %arg10[%c0_23, %c0_24] : memref<1x64xf32, #tpu.memory_space<vmem>>, vector<1x64xf32>
      %66 = vector.shape_cast %65 : vector<1x64xf32> to vector<1x1x64xf32>
      %67 = vector.broadcast %66 : vector<1x1x64xf32> to vector<8x8x64xf32>
      %68 = arith.addf %64, %67 : vector<8x8x64xf32>
      %cst_25 = arith.constant 0.000000e+00 : f32
      %69 = vector.broadcast %cst_25 : f32 to vector<8x8x64xf32>
      %70 = arith.maximumf %68, %69 : vector<8x8x64xf32>
      %71 = vector.shape_cast %70 : vector<8x8x64xf32> to vector<64x64xf32>
      %72 = arith.truncf %71 : vector<64x64xf32> to vector<64x64xbf16>
      %c0_26 = arith.constant 0 : index
      %c0_27 = arith.constant 0 : index
      %73 = vector.load %arg11[%c0_26, %c0_27] : memref<64x64xbf16, #tpu.memory_space<vmem>>, vector<64x64xbf16>
      %cst_28 = arith.constant dense<0.000000e+00> : vector<64x64xf32>
      %74 = tpu.matmul %72, %73, %cst_28 {dimension_numbers = #tpu.dot_dimension_numbers<[1], [0], [0], [1], [0, 0, 1, 1], [], []>} : vector<64x64xbf16>, vector<64x64xbf16>, vector<64x64xf32> -> vector<64x64xf32>
      %c0_29 = arith.constant 0 : index
      %c0_30 = arith.constant 0 : index
      %75 = vector.load %arg12[%c0_29, %c0_30] : memref<1x64xf32, #tpu.memory_space<vmem>>, vector<1x64xf32>
      %76 = vector.broadcast %75 : vector<1x64xf32> to vector<64x64xf32>
      %77 = arith.addf %74, %76 : vector<64x64xf32>
      %cst_31 = arith.constant 0.000000e+00 : f32
      %78 = vector.broadcast %cst_31 : f32 to vector<64x64xf32>
      %79 = arith.maximumf %77, %78 : vector<64x64xf32>
      %80 = vector.shape_cast %79 : vector<64x64xf32> to vector<8x8x64xf32>
      %c0_32 = arith.constant 0 : index
      %c0_33 = arith.constant 0 : index
      %81 = vector.load %arg13[%c0_32, %c0_33] : memref<1x64xf32, #tpu.memory_space<vmem>>, vector<1x64xf32>
      %82 = vector.shape_cast %81 : vector<1x64xf32> to vector<1x1x64xf32>
      %83 = vector.broadcast %82 : vector<1x1x64xf32> to vector<8x8x64xf32>
      %84 = arith.mulf %80, %83 : vector<8x8x64xf32>
      %cst_34 = arith.constant dense<0.000000e+00> : vector<8x8xf32>
      %85 = vector.multi_reduction <add>, %84, %cst_34 [2] : vector<8x8x64xf32> to vector<8x8xf32>
      %86 = tpu.iota {dimensions = array<i32: 0>} : vector<8x8xi32>
      %87 = vector.broadcast %6 : i32 to vector<8x8xi32>
      %88 = arith.addi %87, %86 : vector<8x8xi32>
      %89 = tpu.iota {dimensions = array<i32: 1>} : vector<8x8xi32>
      %90 = vector.broadcast %8 : i32 to vector<8x8xi32>
      %91 = arith.addi %90, %89 : vector<8x8xi32>
      %92 = arith.cmpi sge, %91, %88 : vector<8x8xi32>
      %93 = arith.select %92, %53, %85 : vector<8x8xi1>, vector<8x8xf32>
      %c0_35 = arith.constant 0 : index
      %c0_36 = arith.constant 0 : index
      %c0_37 = arith.constant 0 : index
      %94 = vector.load %arg14[%c0_35, %c0_36, %c0_37] : memref<1x8x8xf32, #tpu.memory_space<vmem>>, vector<1x8x8xf32>
      %95 = vector.shape_cast %94 : vector<1x8x8xf32> to vector<8x8xf32>
      %96 = vector.shape_cast %93 : vector<8x8xf32> to vector<1x8x8xf32>
      tpu.vector_store %arg14[%c0_35, %c0_36, %c0_37], %96 {strides = array<i32>} : memref<1x8x8xf32, #tpu.memory_space<vmem>>, vector<1x8x8xf32>,
    } else {
    }
    return
  }
  func.func @transform_0(%arg0: i32, %arg1: i32, %arg2: i32) -> (i32, i32, i32) {
    %c0_i32 = arith.constant 0 : i32
    %c0_i32_0 = arith.constant 0 : i32
    %c0_i32_1 = arith.constant 0 : i32
    return %arg0, %c0_i32, %c0_i32_0 : i32, i32, i32
  }
  func.func @transform_1(%arg0: i32, %arg1: i32, %arg2: i32) -> (i32, i32, i32) {
    %c0_i32 = arith.constant 0 : i32
    %c0_i32_0 = arith.constant 0 : i32
    %c0_i32_1 = arith.constant 0 : i32
    return %arg0, %c0_i32, %c0_i32_0 : i32, i32, i32
  }
  func.func @transform_2(%arg0: i32, %arg1: i32, %arg2: i32) -> (i32, i32) {
    %c0_i32 = arith.constant 0 : i32
    %c0_i32_0 = arith.constant 0 : i32
    %c0_i32_1 = arith.constant 0 : i32
    return %c0_i32, %c0_i32_0 : i32, i32
  }
  func.func @transform_3(%arg0: i32, %arg1: i32, %arg2: i32) -> (i32, i32) {
    %c0_i32 = arith.constant 0 : i32
    %c0_i32_0 = arith.constant 0 : i32
    %c0_i32_1 = arith.constant 0 : i32
    return %c0_i32, %c0_i32_0 : i32, i32
  }
  func.func @transform_4(%arg0: i32, %arg1: i32, %arg2: i32) -> (i32, i32) {
    %c0_i32 = arith.constant 0 : i32
    %c0_i32_0 = arith.constant 0 : i32
    %c0_i32_1 = arith.constant 0 : i32
    return %c0_i32, %c0_i32_0 : i32, i32
  }
  func.func @transform_5(%arg0: i32, %arg1: i32, %arg2: i32) -> (i32, i32) {
    %c0_i32 = arith.constant 0 : i32
    %c0_i32_0 = arith.constant 0 : i32
    %c0_i32_1 = arith.constant 0 : i32
    return %c0_i32, %c0_i32_0 : i32, i32
  }
  func.func @transform_6(%arg0: i32, %arg1: i32, %arg2: i32) -> (i32, i32) {
    %c0_i32 = arith.constant 0 : i32
    %c0_i32_0 = arith.constant 0 : i32
    %c0_i32_1 = arith.constant 0 : i32
    return %c0_i32, %c0_i32_0 : i32, i32
  }
  func.func @transform_7(%arg0: i32, %arg1: i32, %arg2: i32) -> (i32, i32) {
    %c0_i32 = arith.constant 0 : i32
    %c0_i32_0 = arith.constant 0 : i32
    %c0_i32_1 = arith.constant 0 : i32
    return %c0_i32, %c0_i32_0 : i32, i32
  }
  func.func @transform_8(%arg0: i32, %arg1: i32, %arg2: i32) -> (i32, i32) {
    %c0_i32 = arith.constant 0 : i32
    %c0_i32_0 = arith.constant 0 : i32
    %c0_i32_1 = arith.constant 0 : i32
    return %c0_i32, %c0_i32_0 : i32, i32
  }
  func.func @transform_9(%arg0: i32, %arg1: i32, %arg2: i32) -> (i32, i32) {
    %c0_i32 = arith.constant 0 : i32
    %c0_i32_0 = arith.constant 0 : i32
    %c0_i32_1 = arith.constant 0 : i32
    return %c0_i32, %c0_i32_0 : i32, i32
  }
  func.func @transform_10(%arg0: i32, %arg1: i32, %arg2: i32) -> (i32, i32) {
    %c0_i32 = arith.constant 0 : i32
    %c0_i32_0 = arith.constant 0 : i32
    %c0_i32_1 = arith.constant 0 : i32
    return %c0_i32, %c0_i32_0 : i32, i32
  }
  func.func @transform_11(%arg0: i32, %arg1: i32, %arg2: i32) -> (i32, i32, i32) {
    %c0_i32 = arith.constant 0 : i32
    return %arg0, %arg1, %arg2 : i32, i32, i32
  }
}

</mosaic_0001>

<bundles_post_ra>
// kernel: tpu_custom_call.1
= control target key start
LH: loop header
LB: loop body
LE: loop exit
PB: predicated region body
PF: predicated region fallthrough
CT: control target
= control target key end

     0   :  { %s3379_s0 = inlined_call_operand.hbm [shape: s32[2,1,16], index: 0, kind: input, shape index: {}]   ;;  %s3380_s1 = inlined_call_operand.hbm [shape: f32[2,16,64], index: 1, kind: input, shape index: {}]   ;;  %s3381_s2 = inlined_call_operand.hbm [shape: bf16[64,256], index: 2, kind: input, shape index: {}]   ;;  %s3382_s3 = inlined_call_operand.vmem [shape: f32[1,64], index: 3, kind: input, shape index: {}]   ;;  %s3383_s4 = inlined_call_operand.hbm [shape: bf16[64,64], index: 4, kind: input, shape index: {}]   ;;  %s3384_s5 = inlined_call_operand.vmem [shape: f32[1,64], index: 5, kind: input, shape index: {}]   ;;  %s3385_s6 = inlined_call_operand.vmem [shape: f32[1,64], index: 6, kind: input, shape index: {}]   ;;  %s3386_s7 = inlined_call_operand.vmem [shape: f32[1,64], index: 7, kind: input, shape index: {}]   ;;  %s3387_s8 = inlined_call_operand.hbm [shape: bf16[64,64], index: 8, kind: input, shape index: {}]   ;;  %s3388_s9 = inlined_call_operand.vmem [shape: f32[1,64], index: 9, kind: input, shape index: {}]   ;;  %s3389_s10 = inlined_call_operand.vmem [shape: f32[1,64], index: 10, kind: input, shape index: {}]   ;;  %s3390_s11 = inlined_call_operand.hbm [shape: f32[2,8,8], index: 11, kind: output, shape index: {}]  }
   0x1   :  { %3399 = sst [smem:[#allocation21_spill]] %s3381_s2 }
   0x2   :  { %3400 = sst [smem:[#allocation22_spill]] %s3383_s4 }
   0x3   :  { %3401 = sst [smem:[#allocation23_spill]] %s3387_s8 }
   0x4   :  { %3402 = sst [smem:[#allocation24_spill]] %s3388_s9 }
   0x5   :  { %3403 = sst [smem:[#allocation25_spill]] %s3389_s10 }
   0x6   :  { %3404 = sst [smem:[#allocation26_spill]] %s3390_s11 }
   0x7   :  { %16 = vsyncpa [#allocation4], 0 }
   0x8   :  { %18 = vsyncpa [#allocation4 + $0x1], 0 }
   0x9   :  { %19 = vsyncpa [#allocation7], 0 }
   0xa   :  { %21 = vsyncpa [#allocation7 + $0x1], 0 }
   0xb   :  { %22 = vsyncpa [#allocation10], 0 }
   0xc   :  { %23 = vsyncpa [#allocation5], 0 }
   0xd   :  { %25 = vsyncpa [#allocation5 + $0x1], 0  ;;  %s2909_s17 = smov 0   ;;  %s2911_s18 = smov 0  }
   0xe   :  { %s2913_s19 = smov 0   ;;  %s2915_s20 = smov 0  }
   0xf   :  { %s2917_s21 = smov 0   ;;  %s2919_s22 = smov 0  }
  0x10 LB: > { %3405 = sst [smem:[#allocation18_spill]] %s2811_s17  ;;  %s2940_s23 = sadd.s32 4294967295, %s2831_s22   ;;  %s2831_s22 = sphi %s2919_s22, %s31_s22   ;;  %s2827_s21 = sphi %s2917_s21, %s3439_s21   ;;  %s2823_s20 = sphi %s2915_s20, %s3438_s20   ;;  %s2819_s19 = sphi %s2913_s19, %s3437_s19   ;;  %s2815_s18 = sphi %s2911_s18, %s3436_s18   ;;  %s2811_s17 = sphi %s2909_s17, %s3435_s17  }
  0x11   : > { %3406 = sst [smem:[#allocation19_spill]] %s2823_s20  ;;  %s2309_s24 = sadd.s32 4294967294, %s2831_s22  }
  0x12   : > { %p70_p0 = scmp.ne.s32.totalorder %s2815_s18, %s2811_s17  ;;  %p3393_p1 = scmp.eq.s32.totalorder %s2940_s23, 0 }
  0x13   : > { %p319_p3 = scmp.eq.s32.totalorder %s2309_s24, 1  ;;  %p2310_p5 = scmp.ge.s32.totalorder %s2831_s22, 1 }
  0x14   : > { %p2949_p4 = por %p3393_p1, %p70_p0  ;;  %p326_p7 = scmp.lt.s32.totalorder %s2831_s22, 3 }
  0x15   : > { %p2954_p6 = por %p319_p3, %p70_p0  ;;  %s2833_s28 = smov [#allocation8]  }
  0x16   : > { %s3407_s25 = scalar_select %p2949_p4, 1, 0 }
  0x17   : > { %s3408_s26 = scalar_select %p2954_p6, 1, 0 }
  0x18   : > { %p2959_p8 = pnand %p2310_p5, %p326_p7  ;;  %s338_s29 = sshll.u32 %s2833_s28, 4  ;;  %s2963_s29 = int_to_ptr.vmem [resolvable:$true] %s338_s29 }
  0x19   : > { %3409 = sst [smem:[#allocation20_spill]] %s3408_s26  ;;  %s2834_s12 = smov [#allocation9]  }
  0x1a   : > { %s3410_s27 = scalar_select %p2959_p8, 1, 0 }
  0x1b   : > { %p2479_p9 = pneg %p2959_p8  ;;  %s354_s13 = sshll.u32 %s2834_s12, 4  ;;  %s2974_s13 = int_to_ptr.vmem [resolvable:$true] %s354_s13 }
  0x1c   : > { %s3412_s2 = sld [smem:[#allocation21_spill]] }
  0x1d   : > { %p2970_p11 = pnand %p2479_p9, %p3393_p1 }
  0x1f   : > { %p2984_p13 = pneg %p2970_p11 }
  0x22   : > { %s2593_s16 = scalar_lea.hbm %s3412_s2, 1024 }
  0x23   : > { %p2594_p12 = scmp.ne.s32.totalorder %s3412_s2, %s2593_s16  ;;  %p2600_p5 = scmp.lt.u32.totalorder %s2593_s16, %s3412_s2 }
  0x25   : > { %p2596_p0 = pnand %p2984_p13, %p2594_p12 }
  0x27   : > { %p2597_p3 = pneg %p2596_p0 }
  0x29   : > { %p2602_p7 = pnand %p2600_p5, %p2597_p3 }
  0x2b   : > { %2605 = shalt.err (!%p2602_p7)
}
  0x2c   : > { %s2606_s14 = scalar_lea.vmem %s2963_s29, 1024  ;;  %p2614_p2 = scmp.lt.s32.totalorder %s2963_s29, %s2963_s29 }
  0x2d   : > { %p2607_p9 = scmp.ne.s32.totalorder %s2963_s29, %s2606_s14  ;;  %p2615_p6 = scmp.lt.s32.totalorder %s2606_s14, %s2606_s14 }
  0x2f   : > { %p2609_p10 = pnand %p2607_p9, %p2984_p13  ;;  %p2616_p12 = por %p2615_p6, %p2614_p2 }
  0x31   : > { %p2610_p1 = pneg %p2609_p10 }
  0x33   : > { %p2617_p0 = pnand %p2616_p12, %p2610_p1 }
  0x35   : > { %2620 = shalt.err (!%p2617_p0)
}
  0x36   : > { %s3395_s15 = smov 128   ;;  %s3396_s17 = smov 8  }
  0x37   : > { %2482 = dma.hbm_to_vmem [thread:$0]  (!%p2970_p11), %s3412_s2, 1024, %s2963_s29, [#allocation7], %s3395_s15, %s3395_s15, %s3396_s17  }
  0x38   : > { %s3414_s4 = sld [smem:[#allocation22_spill]] }
  0x3e   : > { %s2621_s14 = scalar_lea.hbm %s3414_s4, 512 }
  0x3f   : > { %p2622_p1 = scmp.ne.s32.totalorder %s3414_s4, %s2621_s14  ;;  %p2628_p10 = scmp.lt.u32.totalorder %s2621_s14, %s3414_s4 }
  0x41   : > { %p2624_p2 = pnand %p2622_p1, %p2984_p13 }
  0x43   : > { %p2625_p6 = pneg %p2624_p2 }
  0x45   : > { %p2630_p3 = pnand %p2628_p10, %p2625_p6 }
  0x47   : > { %2633 = shalt.err (!%p2630_p3)
}
  0x48   : > { %s2634_s29 = scalar_lea.vmem %s2974_s13, 512  ;;  %p2642_p12 = scmp.lt.s32.totalorder %s2974_s13, %s2974_s13 }
  0x49   : > { %p2635_p5 = scmp.ne.s32.totalorder %s2974_s13, %s2634_s29  ;;  %p2643_p0 = scmp.lt.s32.totalorder %s2634_s29, %s2634_s29 }
  0x4b   : > { %p2637_p7 = pnand %p2635_p5, %p2984_p13  ;;  %p2644_p1 = por %p2643_p0, %p2642_p12 }
  0x4d   : > { %p2638_p9 = pneg %p2637_p7 }
  0x4f   : > { %p2645_p2 = pnand %p2644_p1, %p2638_p9 }
  0x51   : > { %2648 = shalt.err (!%p2645_p2)
}
  0x52   : > { %s2837_s11 = smov 64   ;;  %s2838_s9 = smov 4  }
  0x53   : > { %2485 = dma.hbm_to_vmem [thread:$0]  (!%p2970_p11), %s3414_s4, 512, %s2974_s13, [#allocation10], %s2837_s11, %s2837_s11, %s2838_s9  }
  0x54   : > { %s2839_s16 = smov [#allocation11]   ;;  %s3415_s8 = sld [smem:[#allocation23_spill]] }
  0x55   : > { %s376_s24 = sshll.u32 %s2839_s16, 4  ;;  %s377_s24 = int_to_ptr.vmem [resolvable:$true] %s376_s24 }
  0x5a   : > { %s2649_s14 = scalar_lea.hbm %s3415_s8, 512 }
  0x5b   : > { %p2650_p6 = scmp.ne.s32.totalorder %s3415_s8, %s2649_s14  ;;  %p2656_p5 = scmp.lt.u32.totalorder %s2649_s14, %s3415_s8 }
  0x5d   : > { %p2652_p10 = pnand %p2650_p6, %p2984_p13 }
  0x5f   : > { %p2653_p3 = pneg %p2652_p10 }
  0x61   : > { %p2658_p7 = pnand %p2656_p5, %p2653_p3 }
  0x63   : > { %2661 = shalt.err (!%p2658_p7)
}
  0x64   : > { %s2662_s13 = scalar_lea.vmem %s377_s24, 512  ;;  %p2670_p1 = scmp.lt.s32.totalorder %s377_s24, %s377_s24 }
  0x65   : > { %p2663_p9 = scmp.ne.s32.totalorder %s377_s24, %s2662_s13  ;;  %p2671_p2 = scmp.lt.s32.totalorder %s2662_s13, %s2662_s13 }
  0x67   : > { %p2665_p12 = pnand %p2663_p9, %p2984_p13  ;;  %p2672_p4 = por %p2671_p2, %p2670_p1 }
  0x69   : > { %p2666_p0 = pneg %p2665_p12 }
  0x6b   : > { %p2673_p8 = pnand %p2672_p4, %p2666_p0 }
  0x6d   : > { %2676 = shalt.err (!%p2673_p8)
}
  0x6e   : > { %2488 = dma.hbm_to_vmem [thread:$0]  (!%p2970_p11), %s3415_s8, 512, %s377_s24, [#allocation10], %s2837_s11, %s2837_s11, %s2838_s9  }
  0x6f   : > { %s50_s2 = sadd.s32 1, %s2827_s21  ;;  %s57_s26 = sadd.s32 1, %s2819_s19 }
  0x70   : > { %p52_p4 = scmp.ge.s32.totalorder %s50_s2, 2  ;;  %p64_p8 = scmp.ne.s32.totalorder %s2819_s19, %s2815_s18 }
  0x71   : > { %p65_p13 = scmp.eq.s32.totalorder %s2831_s22, 0  ;;  %p3416_p10 = scmp.eq.s32.totalorder %s2940_s23, 1 }
  0x72   : > { %s3441_s2 = smov (%p52_p4, %s50_s2), 0  ;;  %p2503_p5 = scmp.lt.s32.totalorder %s2831_s22, 2 }
  0x73   : > { %p66_p6 = por %p65_p13, %p64_p8  ;;  %p3058_p3 = por %p3416_p10, %p64_p8 }
  0x74   : > { %s54_s17 = ssub.s32 %s2827_s21, %s3441_s2  ;;  %s3066_s20 = sand.u32 1, %s2819_s19  }
  0x75   : > { %p55_p7 = scmp.eq.s32.totalorder %s54_s17, 0  ;;  %s2315_s9 = sshll.u32 %s2827_s21, 4 }
  0x76   : > { %s399_s16 = scalar_lea.vmem [#allocation3], %s3066_s20  ;;  %s3076_s14 = scalar_lea.hbm %s3379_s0, %s2315_s9 }
  0x77   : > { %s3069_s11 = scalar_select %p55_p7, %s2819_s19, %s57_s26  }
  0x78   : > { %s406_s24 = sshll.u32 %s399_s16, 4  ;;  %p3080_p11 = pnand %p2503_p5, %p66_p6  ;;  %s3078_s24 = int_to_ptr.vmem [resolvable:$true] %s406_s24 }
  0x79   : > { %s2316_s13 = sshll.u32 %s3066_s20, 4  ;;  %s2391_s15 = sshll.u32 %s2827_s21, 8 }
  0x7a   : > { %s3086_s10 = scalar_lea.vmem [#allocation6], %s2316_s13  ;;  %s397_s17 = scalar_lea.sflag [#allocation4], %s3066_s20 }
  0x7b   : > { %s424_s26 = sshll.u32 %s3086_s10, 4  ;;  %s2677_s9 = scalar_lea.hbm %s3076_s14, 16  ;;  %s3117_s26 = int_to_ptr.vmem [resolvable:$true] %s424_s26 }
  0x7c   : > { %p2678_p9 = scmp.ne.s32.totalorder %s3076_s14, %s2677_s9  ;;  %p2679_p12 = pneg %p3080_p11 }
  0x7d   : > { %s2682_s12 = scalar_lea.hbm %s3379_s0, 32  ;;  %p2683_p2 = scmp.lt.u32.totalorder %s3076_s14, %s3379_s0 }
  0x7e   : > { %p2680_p0 = pnand %p2679_p12, %p2678_p9  ;;  %p2684_p4 = scmp.lt.u32.totalorder %s2682_s12, %s2677_s9 }
  0x7f   : > { %p2686_p13 = scmp.lt.u32.totalorder %s2677_s9, %s3076_s14 }
  0x80   : > { %p2681_p1 = pneg %p2680_p0  ;;  %p2685_p8 = por %p2684_p4, %p2683_p2 }
  0x82   : > { %p2687_p6 = por %p2686_p13, %p2685_p8 }
  0x84   : > { %p2688_p10 = pnand %p2687_p6, %p2681_p1 }
  0x86   : > { %2691 = shalt.err (!%p2688_p10)
}
  0x87   : > { %s2692_s20 = scalar_lea.vmem %s3078_s24, 16  ;;  %s2840_s13 = smov [#allocation3]  }
  0x88   : > { %p2693_p5 = scmp.ne.s32.totalorder %s3078_s24, %s2692_s20  ;;  %s2697_s16 = sshll.u32 %s2840_s13, 4  ;;  %s2698_s16 = int_to_ptr.vmem [resolvable:$false] %s2697_s16 }
  0x89   : > { %s2699_s4 = scalar_lea.vmem %s2698_s16, 32  ;;  %p2700_p0 = scmp.lt.s32.totalorder %s3078_s24, %s2698_s16 }
  0x8a   : > { %p2695_p7 = pnand %p2693_p5, %p2679_p12  ;;  %p2701_p2 = scmp.lt.s32.totalorder %s2699_s4, %s2692_s20 }
  0x8c   : > { %p2696_p9 = pneg %p2695_p7  ;;  %p2702_p4 = por %p2701_p2, %p2700_p0 }
  0x8e   : > { %p2703_p8 = pnand %p2702_p4, %p2696_p9 }
  0x90   : > { %2706 = shalt.err (!%p2703_p8)
}
  0x91   : > { %2492 = dma.hbm_to_vmem [thread:$0]  (!%p3080_p11), %s3076_s14, 16, %s3078_s24, %s397_s17  }
  0x92   : > { %s413_s8 = sand.u32 1, %s2831_s22   ;;  %s3125_s12 = scalar_lea.hbm %s3380_s1, %s2391_s15 }
  0x93   : > { %s3127_s20 = scalar_lea.sflag [#allocation7], %s413_s8  ;;  %s2707_s13 = scalar_lea.hbm %s3125_s12, 256 }
  0x94   : > { %p2708_p1 = scmp.ne.s32.totalorder %s3125_s12, %s2707_s13  ;;  %s2712_s10 = scalar_lea.hbm %s3380_s1, 512 }
  0x95   : > { %p2713_p10 = scmp.lt.u32.totalorder %s3125_s12, %s3380_s1  ;;  %p2714_p5 = scmp.lt.u32.totalorder %s2712_s10, %s2707_s13 }
  0x96   : > { %p2710_p13 = pnand %p2708_p1, %p2679_p12  ;;  %p2716_p9 = scmp.lt.u32.totalorder %s2707_s13, %s3125_s12 }
  0x97   : > { %p2715_p7 = por %p2714_p5, %p2713_p10 }
  0x98   : > { %p2711_p6 = pneg %p2710_p13 }
  0x99   : > { %p2717_p0 = por %p2716_p9, %p2715_p7 }
  0x9b   : > { %p2718_p2 = pnand %p2717_p0, %p2711_p6 }
  0x9d   : > { %2721 = shalt.err (!%p2718_p2)
}
  0x9e   : > { %s2722_s15 = scalar_lea.vmem %s3117_s26, 256  ;;  %s2841_s4 = smov [#allocation6]  }
  0x9f   : > { %p2723_p4 = scmp.ne.s32.totalorder %s3117_s26, %s2722_s15  ;;  %s2727_s8 = sshll.u32 %s2841_s4, 4  ;;  %s2728_s8 = int_to_ptr.vmem [resolvable:$false] %s2727_s8 }
  0xa0   : > { %s2729_s9 = scalar_lea.vmem %s2728_s8, 512  ;;  %p2730_p13 = scmp.lt.s32.totalorder %s3117_s26, %s2728_s8 }
  0xa1   : > { %p2725_p8 = pnand %p2723_p4, %p2679_p12  ;;  %p2731_p10 = scmp.lt.s32.totalorder %s2729_s9, %s2722_s15 }
  0xa3   : > { %p2726_p1 = pneg %p2725_p8  ;;  %p2732_p5 = por %p2731_p10, %p2730_p13 }
  0xa5   : > { %p2733_p7 = pnand %p2732_p5, %p2726_p1 }
  0xa7   : > { %2736 = shalt.err (!%p2733_p7)
}
  0xa8   : > { %s3419_s28 = smov 8   ;;  %s3420_s13 = smov 128  }
  0xa9   : > { %2495 = dma.hbm_to_vmem [thread:$0]  (!%p3080_p11), %s3125_s12, 256, %s3117_s26, %s3127_s20, %s3420_s13, %s3420_s13, %s3419_s28  }
  0xaa   : > { %p3421_p12 = scmp.ne.s32.totalorder %s3410_s27, 0 }
  0xab   : > { %s3159_s24 = sand.u32 (!%p3421_p12), 1, %s2815_s18   ;;  %p3422_p6 = scmp.ne.s32.totalorder (!%p3421_p12), %s3407_s25, 0 }
  0xac   : > { %436 = sbr.rel (%p3421_p12) target bundleno = 1171 (0x493), region = 64  ;;  %s439_s14 = scalar_lea.sflag (!%p3421_p12), [#allocation4], %s3159_s24 }
  0xad   : > { %s441_s10 = scalar_lea.vmem (!%p3421_p12), [#allocation3], %s3159_s24 }
  0xb3   : > { %2790 = dma.done.wait (%p3422_p6), %s439_s14, 16  }
  0xb4   : > { %2792 = vsyncadd (%p3422_p6), %s439_s14, 4294967280  ;;  %s446_s29 = sand.u32 1, %s2940_s23   ;;  %s2320_s26 = sshll.u32 %s3159_s24, 4 }
  0xb5   : > { %s447_s27 = scalar_lea.sflag [#allocation7], %s446_s29  ;;  %s450_s12 = scalar_lea.vmem [#allocation6], %s2320_s26 }
  0xb6   : > { %2794 = dma.done.wait (%p3422_p6), %s447_s27, 256  }
  0xb7   : > { %2796 = vsyncadd (%p3422_p6), %s447_s27, 4294967040  ;;  %p3423_p11 = scmp.eq.s32.totalorder %s2940_s23, 0 }
  0xb9   : > { %2798 = dma.done.wait (%p3423_p11), [#allocation7], 1024   ;;  %p3424_p9 = pmov %p3423_p11 }
  0xbb   : > { %2800 = vsyncadd (%p3424_p9), [#allocation7], 4294966272  ;;  %p3425_p0 = pmov %p3424_p9 }
  0xbd   : > { %2802 = dma.done.wait (%p3425_p0), [#allocation10], 1024   ;;  %p3426_p2 = pmov %p3425_p0 }
  0xbe   : > { %v513_v0 = vlaneseq  ;;  %v2842_v1 = vmov 0.0|0.0   ;;  %vm2843_vm0 = vmmov 0   ;;  %v2844_v2 = vmov 0.0   ;;  %v526_v4 = vld [vmem:[%s450_s12] sm:$0xff]  ;;  %v527_v5 = vld [vmem:[%s450_s12 + $0x8] sm:$0xff]  ;;  %s2846_s23 = smov 64  }
  0xbf   : > { %2804 = vsyncadd (%p3426_p2), [#allocation10], 4294966272  ;;  %2450 = vmatprep.subr.bf16.mxu0 %v2842_v1  ;;  %2415 = vmatprep.mubr.msk.f32.mxu0 %vm2843_vm0, %v2844_v2  ;;  %v2325_v6 = vld [vmem:[%s441_s10] ss:$0 sm:$0xff]  ;;  %v2451_v7 = vpack.c.bf16 %v527_v5, %v526_v4  ;;  %vm522_vm2 = vcmask 130048   ;;  %v2845_v18 = vmov 0  }
  0xc0   : > { %v3182_v3 = vshrl.u32 %v513_v0, 7  ;;  %v2569_v10 = vld [vmem:[#allocation8 + $0x4] ss:$8 sps:$4 sm:$0xff]   ;;  %v2571_v11 = vld [vmem:[#allocation8] ss:$8 sps:$4 sm:$0xff]   ;;  %689 = vmatprep.mubr.bf16.mxu1 %v2845_v18  ;;  %vm653_vm3 = vcmask 523264  }
  0xc1   : > { %2452 = vmatpush3.bf16.msra.mxu0 %v2451_v7  ;;  %v2572_v12 = vld [vmem:[#allocation8 + $0x14] ss:$8 sps:$4 sm:$0xff]   ;;  %657 = vmatprep.subr.bf16.mxu1 %v2569_v10  ;;  %v2574_v13 = vld [vmem:[#allocation8 + $0x10] ss:$8 sps:$4 sm:$0xff]   ;;  %v2575_v14 = vld [vmem:[#allocation8 + $0x24] ss:$8 sps:$4 sm:$0xff]  }
  0xc2   : > { %vm519_vm1 = vcmp.eq.s32.totalorder %v2325_v6, %v3182_v3  ;;  %658 = vmatpush1.bf16.msra.mxu1 %v2571_v11  ;;  %v2577_v15 = vld [vmem:[#allocation8 + $0x20] ss:$8 sps:$4 sm:$0xff]   ;;  %v2578_v16 = vld [vmem:[#allocation8 + $0x34] ss:$8 sps:$4 sm:$0xff]   ;;  %v2580_v17 = vld [vmem:[#allocation8 + $0x30] ss:$8 sps:$4 sm:$0xff]  }
  0xc3   : > { %v2326_v8 = vsel %vm519_vm1, 1.0, %v2844_v2  ;;  %659 = vmatprep.subr.bf16.mxu1 %v2572_v12  ;;  %v2581_v26 = vld [vmem:[#allocation9] sm:$0xff]   ;;  %v2583_v28 = vld [vmem:[#allocation9 + $0x8] sm:$0xff]   ;;  %v2585_v30 = vld [vmem:[#allocation9 + $0x10] sm:$0xff]   ;;  %v2847_v38 = vmov 1966171168  }
  0xc4   : > { %v523_v9 = vsel %vm522_vm2, %v2326_v8, 0.0  ;;  %2416 = vmatmul.mubr.msk.f32.vlgmr.msra.gmra.mrb[0].mxu0 %vm522_vm2, %v2326_v8  ;;  %v3186_v27 = vld [vmem:[#allocation11] sm:$0xff]   ;;  %2418 = vmatprep.subr.bf16.mxu0 %v2581_v26  ;;  %v3188_v29 = vld [vmem:[#allocation11 + $0x8] sm:$0xff]   ;;  %v3193_v31 = vld [vmem:[#allocation11 + $0x10] sm:$0xff]   ;;  %v1444_v39 = vunpack.c.l.s4 %v2847_v38  ;;  %v3209_v62 = vsub.s32 0, %v3182_v3  ;;  %s3427_s14 = sld [smem:[#allocation24_spill]] }
  0xc5   : > { %524 = vadd.xlane.f32.xlu0 %v523_v9  ;;  %2419 = vmatpush3.bf16.msra.mxu0 %v2581_v26  ;;  %v2587_v32 = vld [vmem:[#allocation9 + $0x18] sm:$0xff]   ;;  %s3428_s26 = sld [smem:[#allocation25_spill]]  ;;  %vm2073_vm4 = vcmask 1041409   ;;  %vm2075_vm5 = vcmask 1042434   ;;  %vm2077_vm6 = vcmask 1043459   ;;  %s2324_s27 = sshll.u32 %s3159_s24, 3 }
  0xc6   : > { %660 = vmatpush1.bf16.msra.mxu1 %v2574_v13  ;;  %2420 = vmatprep.subr.bf16.mxu0 %v2583_v28  ;;  %v3197_v33 = vld [vmem:[#allocation11 + $0x18] sm:$0xff]   ;;  %v1445_v40 = vunpack.c.0.s8 %v1444_v39  ;;  %vm2079_vm7 = vcmask 1044484   ;;  %s3429_s12 = sld [smem:[#allocation19_spill]]  ;;  %vm2083_vm8 = vcmask 1046534   ;;  %vm2081_vm9 = vcmask 1045509   ;;  %s504_s25 = scalar_lea.vmem [#allocation12], %s2324_s27 }
  0xc7   : > { %661 = vmatprep.subr.bf16.mxu1 %v2575_v14  ;;  %vm2085_vm10 = vcmask 1047559   ;;  %s2155_s20 = sshll.u32 %s504_s25, 4  ;;  %vm2137_vm12 = vcmask 64512   ;;  %s3430_s15 = sld [smem:[#allocation26_spill]]  ;;  %s3332_s20 = int_to_ptr.vmem [resolvable:$true] %s2155_s20 }
  0xc8   : > { %v1448_v43 = vsub.s32 %v1445_v40, %v3182_v3  ;;  %s2140_s8 = scalar_lea.sflag [#allocation5], %s3159_s24  ;;  %s2737_s9 = scalar_lea.vmem %s3332_s20, 128 }
  0xc9   : > { %2421 = vmatpush3.bf16.msra.mxu0 %v2583_v28  ;;  %p2738_p4 = scmp.ne.s32.totalorder %s3332_s20, %s2737_s9  ;;  %s2848_s28 = smov [#allocation12]  }
  0xca   : > { %662 = vmatpush1.bf16.msra.mxu1 %v2577_v15  ;;  %2422 = vmatprep.subr.bf16.mxu0 %v2585_v30  ;;  %s2741_s13 = sshll.u32 %s2848_s28, 4  ;;  %s2742_s13 = int_to_ptr.vmem [resolvable:$false] %s2741_s13 }
  0xcb   : > { %663 = vmatprep.subr.bf16.mxu1 %v2578_v16  ;;  %p2739_p8 = pnand %p2738_p4, %p3058_p3  ;;  %p2744_p13 = scmp.lt.s32.totalorder %s3332_s20, %s2742_s13 }
  0xcd   : > { %2423 = vmatpush3.bf16.msra.mxu0 %v2585_v30  ;;  %p2740_p1 = pneg %p2739_p8 }
  0xce   : > { %664 = vmatpush1.bf16.msra.mxu1 %v2580_v17  ;;  %2424 = vmatprep.subr.bf16.mxu0 %v2587_v32 }
  0xcf   : > { %2453 = vmatprep.subr.bf16.mxu1 %v3186_v27 }
  0xd1   : > { %2425 = vmatpush3.bf16.msra.mxu0 %v2587_v32 }
  0xd2   : > { %2434 = vmatprep.subr.bf16.mxu0 %v3186_v27 }
 0x152   : > { %v525_v19 = vpop.xlane.xlu0 %524 }
 0x153   : > { %v601_v20 = vmax.f32 %v525_v19, 1.0 }
 0x155   : > { %2591 = vrcp.f32 %v601_v20 }
 0x15f   : > { %v2592_v21 = vpop.eup %2591 }
 0x197   : > { %v597_v22 = vpop.f32.mrb[0].mxu0 }
 0x198   : > { %v603_v23 = vmul.f32 %v2592_v21, %v597_v22  ;;  %v2417_v24 = vpop.f32.mrb[1].mxu0 }
 0x19a   : > { %v604_v25 = vpack.c.bf16 %v603_v23, %v603_v23  ;;  %v2363_v23 = vld [vmem:[%s3382_s3] ss:$0 sm:$0xff] }
 0x19c   : > { %2336 = vmatmul.mubr.msk.bf16.vlgmr.msra.gmra.mrb[0].mxu1 %vm653_vm3, %v604_v25 }
 0x19d   : > { %2457 = vmatpush3.bf16.msra.mxu1 %v3186_v27 }
 0x19e   : > { %2454 = vmatprep.subr.bf16.mxu1 %v3188_v29 }
 0x1a1   : > { %2458 = vmatpush3.bf16.msra.mxu1 %v3188_v29 }
 0x1a2   : > { %2455 = vmatprep.subr.bf16.mxu1 %v3193_v31 }
 0x1a5   : > { %2459 = vmatpush3.bf16.msra.mxu1 %v3193_v31 }
 0x1a6   : > { %2456 = vmatprep.subr.bf16.mxu1 %v3197_v33 }
 0x1a9   : > { %2460 = vmatpush3.bf16.msra.mxu1 %v3197_v33 }
 0x26f   : > { %v691_v34 = vpop.f32.mrb[0].mxu1 }
 0x270   : > { %698 = vst.msk [vmem:[#allocation2] sm:$0xff] %vm653_vm3, %v691_v34  ;;  %700 = vrot.lane.b32.xlu0 %v691_v34, %s2846_s23  ;;  %v693_v35 = vpop.f32.mrb[1].mxu1 }
 0x271   : > { %706 = vst.msk [vmem:[#allocation2 + $0x10] sm:$0xff] %vm653_vm3, %v693_v35  ;;  %708 = vrot.lane.b32.xlu1 %v693_v35, %s2846_s23  ;;  %v695_v36 = vpop.f32.mrb[2].mxu1  ;;  %s2388_s23 = sshll.u32 %s3429_s12, 7 }
 0x272   : > { %v696_v37 = vpop.f32.mrb[3].mxu1  ;;  %s3330_s4 = scalar_lea.hbm %s3430_s15, %s2388_s23 }
 0x273   : > { %v2376_v37 = vld [vmem:[%s3386_s7] ss:$0 sm:$0xff] }
 0x277   : > { %v1438_v41 = vld [vmem:[#allocation2] sm:$0xff] }
 0x278   : > { %v2374_v42 = vld [vmem:[#allocation2 + $0x10] sm:$0xff]  ;;  %v1442_v44 = vcombine.high %v1438_v41, %v1438_v41  ;;  %v1449_v46 = vrot.slane %v1438_v41, %v1448_v43 }
 0x279   : > { %v1737_v45 = vcombine.high %v2374_v42, %v2374_v42  ;;  %v1744_v51 = vrot.slane %v2374_v42, %v1448_v43 }
 0x27a   : > { %v1456_v47 = vrot.slane %v1442_v44, %v1448_v43  ;;  %v1457_v49 = vcombine.high %v1449_v46, %v1449_v46  ;;  %v1465_v53 = vrot.slane %v1449_v46, %v1448_v43 }
 0x27b   : > { %v1751_v48 = vrot.slane %v1737_v45, %v1448_v43  ;;  %v1752_v58 = vcombine.high %v1744_v51, %v1744_v51  ;;  %v3206_v61 = vrot.slane %v1744_v51, %v1448_v43 }
 0x27c   : > { %v1458_v50 = vcombine.high %v1456_v47, %v1456_v47  ;;  %v1479_v54 = vrot.slane %v1457_v49, %v1448_v43  ;;  %v1472_v56 = vrot.slane %v1456_v47, %v1448_v43  ;;  %v1487_v1 = vcombine.high %v1465_v53, %v1465_v53 }
 0x27d   : > { %v1753_v52 = vcombine.high %v1751_v48, %v1751_v48  ;;  %v1767_v55 = vrot.slane %v1751_v48, %v1448_v43  ;;  %v3213_v7 = vrot.slane %v1752_v58, %v1448_v43  ;;  %v1782_v9 = vcombine.high %v3206_v61, %v3206_v61 }
 0x27e   : > { %v1486_v57 = vrot.slane %v1458_v50, %v1448_v43  ;;  %v1489_v2 = vcombine.high %v1479_v54, %v1479_v54  ;;  %v1488_v5 = vcombine.high %v1472_v56, %v1472_v56  ;;  %v1494_v10 = vrot.slane %v1465_v53, %v3209_v62 }
 0x27f   : > { %v1781_v60 = vrot.slane %v1753_v52, %v1448_v43  ;;  %v1783_v4 = vcombine.high %v1767_v55, %v1767_v55  ;;  %v1498_v11 = vrot.slane %v1479_v54, %v3209_v62  ;;  %v1502_v12 = vrot.slane %v1487_v1, %v3209_v62 }
 0x280   : > { %v1490_v6 = vcombine.high %v1486_v57, %v1486_v57  ;;  %v1805_v13 = vrot.slane %v1767_v55, %v3209_v62  ;;  %v1506_v14 = vrot.slane %v1489_v2, %v3209_v62  ;;  %v1510_v16 = vrot.slane %v1472_v56, %v3209_v62 }
 0x281   : > { %v1785_v8 = vcombine.high %v1781_v60, %v1781_v60  ;;  %v1809_v15 = vrot.slane %v1781_v60, %v3209_v62  ;;  %v1514_v17 = vrot.slane %v1486_v57, %v3209_v62  ;;  %v1813_v18 = vrot.slane %v1783_v4, %v3209_v62 }
 0x282   : > { %v1518_v19 = vrot.slane %v1488_v5, %v3209_v62  ;;  %v1522_v20 = vrot.slane %v1490_v6, %v3209_v62  ;;  %v1784_v21 = vcombine.high %v3213_v7, %v3213_v7  ;;  %v1789_v25 = vrot.slane %v3206_v61, %v3209_v62 }
 0x283   : > { %v1817_v24 = vrot.slane %v1785_v8, %v3209_v62  ;;  %v1793_v26 = vrot.slane %v3213_v7, %v3209_v62  ;;  %v1797_v28 = vrot.slane %v1782_v9, %v3209_v62 }
 0x2e2   : > { %v701_v59 = vpop.permute.xlu0 %700 }
 0x2e3   : > { %704 = vst.msk [vmem:[#allocation2 + $0x8] sm:$0xff] %vm653_vm3, %v701_v59  ;;  %v709_v63 = vpop.permute.xlu1 %708 }
 0x2e4   : > { %712 = vst.msk [vmem:[#allocation2 + $0x18] sm:$0xff] %vm653_vm3, %v709_v63 }
 0x2ea   : > { %v2362_v22 = vld [vmem:[#allocation2 + $0x8] sm:$0xff] }
 0x2eb   : > { %v1531_v30 = vadd.f32 %v2362_v22, %v1494_v10  ;;  %v1532_v32 = vadd.f32 %v2362_v22, %v1498_v11  ;;  %v1533_v34 = vadd.f32 %v2362_v22, %v1502_v12  ;;  %v1534_v35 = vadd.f32 %v2362_v22, %v1506_v14  ;;  %v2375_v36 = vld [vmem:[#allocation2 + $0x18] sm:$0xff] }
 0x2ec   : > { %v1830_v38 = vadd.f32 %v2375_v36, %v1805_v13  ;;  %v1831_v39 = vadd.f32 %v2375_v36, %v1809_v15  ;;  %v1535_v40 = vadd.f32 %v2362_v22, %v1510_v16  ;;  %v1536_v41 = vadd.f32 %v2362_v22, %v1514_v17 }
 0x2ed   : > { %v1546_v42 = vadd.f32 %v2363_v23, %v1531_v30  ;;  %v1547_v43 = vadd.f32 %v2363_v23, %v1532_v32  ;;  %v1548_v44 = vadd.f32 %v2363_v23, %v1533_v34  ;;  %v1549_v45 = vadd.f32 %v2363_v23, %v1534_v35 }
 0x2ee   : > { %v1845_v46 = vadd.f32 %v2376_v37, %v1830_v38  ;;  %v1846_v47 = vadd.f32 %v2376_v37, %v1831_v39  ;;  %v1550_v48 = vadd.f32 %v2363_v23, %v1535_v40  ;;  %v1551_v49 = vadd.f32 %v2363_v23, %v1536_v41  ;;  %v2377_v40 = vld [vmem:[%s3427_s14] ss:$0 sm:$0xff]  ;;  %s2743_s14 = scalar_lea.vmem %s2742_s13, 256 }
 0x2ef   : > { %v1554_v50 = vmax.f32 %v1546_v42, 0.0  ;;  %v1555_v51 = vmax.f32 %v1547_v43, 0.0  ;;  %v1556_v52 = vmax.f32 %v1548_v44, 0.0  ;;  %v1557_v53 = vmax.f32 %v1549_v45, 0.0  ;;  %p2745_p10 = scmp.lt.s32.totalorder %s2743_s14, %s2737_s9 }
 0x2f0   : > { %v1853_v54 = vmax.f32 %v1845_v46, 0.0  ;;  %v1854_v55 = vmax.f32 %v1846_v47, 0.0  ;;  %v1558_v56 = vmax.f32 %v1550_v48, 0.0  ;;  %v1559_v57 = vmax.f32 %v1551_v49, 0.0 }
 0x2f1   : > { %v1562_v58 = vpack.c.bf16 %v1555_v51, %v1554_v50  ;;  %v1563_v59 = vpack.c.bf16 %v1557_v53, %v1556_v52  ;;  %v1832_v60 = vadd.f32 %v2375_v36, %v1813_v18  ;;  %v1833_v61 = vadd.f32 %v2375_v36, %v1817_v24  ;;  %v3281_v52 = vld [vmem:[%s3428_s26] ss:$0 sm:$0xff]  ;;  %p2746_p5 = por %p2745_p10, %p2744_p13 }
 0x2f2   : > { %v1859_v63 = vpack.c.bf16 %v1854_v55, %v1853_v54  ;;  %v1564_v1 = vpack.c.bf16 %v1559_v57, %v1558_v56  ;;  %v1537_v2 = vadd.f32 %v2362_v22, %v1518_v19  ;;  %v1538_v4 = vadd.f32 %v2362_v22, %v1522_v20 }
 0x2f3   : > { %2426 = vmatprep.mubr.msk.bf16.mxu0 %vm653_vm3, %v1562_v58  ;;  %v1847_v5 = vadd.f32 %v2376_v37, %v1832_v60  ;;  %v1848_v6 = vadd.f32 %v2376_v37, %v1833_v61  ;;  %v1826_v7 = vadd.f32 %v2375_v36, %v1789_v25  ;;  %v1827_v8 = vadd.f32 %v2375_v36, %v1793_v26  ;;  %p2747_p7 = pnand %p2746_p5, %p2740_p1 }
 0x2f4   : > { %2427 = vmatmul.mubr.msk.bf16.vlgmr.msra.gmra.mrb[4].mxu0 %vm653_vm3, %v1563_v59  ;;  %2446 = vmatprep.mubr.msk.bf16.mxu1 %vm653_vm3, %v1859_v63  ;;  %v1552_v9 = vadd.f32 %v2363_v23, %v1537_v2  ;;  %v1553_v10 = vadd.f32 %v2363_v23, %v1538_v4  ;;  %v1801_v11 = vrot.slane %v1784_v21, %v3209_v62 }
 0x2f5   : > { %2430 = vmatprep.mubr.msk.bf16.mxu0 %vm653_vm3, %v1564_v1  ;;  %2435 = vmatpush3.bf16.msra.mxu0 %v3186_v27  ;;  %v1855_v12 = vmax.f32 %v1847_v5, 0.0  ;;  %v1856_v13 = vmax.f32 %v1848_v6, 0.0  ;;  %v1841_v14 = vadd.f32 %v2376_v37, %v1826_v7  ;;  %v1842_v15 = vadd.f32 %v2376_v37, %v1827_v8 }
 0x2f6   : > { %2436 = vmatprep.subr.bf16.mxu0 %v3188_v29  ;;  %v1560_v16 = vmax.f32 %v1552_v9, 0.0  ;;  %v1561_v17 = vmax.f32 %v1553_v10, 0.0  ;;  %v1828_v18 = vadd.f32 %v2375_v36, %v1797_v28  ;;  %v1829_v19 = vadd.f32 %v2375_v36, %v1801_v11  ;;  %v3268_v36 = vld [vmem:[%s3385_s6] ss:$0 sm:$0xff] }
 0x2f7   : > { %v1860_v20 = vpack.c.bf16 %v1856_v13, %v1855_v12  ;;  %v1849_v22 = vmax.f32 %v1841_v14, 0.0  ;;  %v1850_v24 = vmax.f32 %v1842_v15, 0.0 }
 0x2f8   : > { %v1565_v62 = vpack.c.bf16 %v1561_v17, %v1560_v16  ;;  %v1843_v27 = vadd.f32 %v2376_v37, %v1828_v18  ;;  %v1844_v21 = vadd.f32 %v2376_v37, %v1829_v19 }
 0x2f9   : > { %2447 = vmatmul.mubr.msk.bf16.vlgmr.msra.gmra.mrb[4].mxu1 %vm653_vm3, %v1860_v20  ;;  %2437 = vmatpush3.bf16.msra.mxu0 %v3188_v29  ;;  %v1857_v23 = vpack.c.bf16 %v1850_v24, %v1849_v22  ;;  %v3261_v29 = vld [vmem:[%s3384_s5] ss:$0 sm:$0xff] }
 0x2fa   : > { %2438 = vmatprep.subr.bf16.mxu0 %v3193_v31  ;;  %v1851_v25 = vmax.f32 %v1843_v27, 0.0  ;;  %v1852_v26 = vmax.f32 %v1844_v21, 0.0 }
 0x2fc   : > { %2431 = vmatmul.mubr.msk.bf16.gmra.mrb[8].mxu0 %vm653_vm3, %v1565_v62  ;;  %v1858_v28 = vpack.c.bf16 %v1852_v26, %v1851_v25 }
 0x2fd   : > { %2439 = vmatpush3.bf16.msra.mxu0 %v3193_v31  ;;  %2442 = vmatprep.mubr.msk.bf16.mxu0 %vm653_vm3, %v1857_v23 }
 0x2fe   : > { %2440 = vmatprep.subr.bf16.mxu0 %v3197_v33 }
 0x301   : > { %2441 = vmatpush3.bf16.msra.mxu0 %v3197_v33 }
 0x304   : > { %2443 = vmatmul.mubr.msk.bf16.vlgmr.msra.gmra.mrb[12].mxu0 %vm653_vm3, %v1858_v28 }
 0x3c7   : > { %v2428_v30 = vpop.f32.mrb[4].mxu0 }
 0x3c8   : > { %v1661_v32 = vadd.f32 %v2428_v30, %v3261_v29  ;;  %v1652_v31 = vpop.f32.mrb[5].mxu0 }
 0x3c9   : > { %v1653_v34 = vadd.f32 %v3261_v29, %v1652_v31  ;;  %v2429_v35 = vpop.f32.mrb[6].mxu0 }
 0x3ca   : > { %v1685_v33 = vmax.f32 %v1661_v32, 0.0  ;;  %v1664_v37 = vadd.f32 %v2429_v35, %v3261_v29  ;;  %v1655_v38 = vpop.f32.mrb[7].mxu0 }
 0x3cb   : > { %v1683_v39 = vmax.f32 %v1653_v34, 0.0  ;;  %v1656_v42 = vadd.f32 %v3261_v29, %v1655_v38 }
 0x3cc   : > { %v2448_v41 = vpop.f32.mrb[4].mxu1  ;;  %v1700_v43 = vmul.f32 %v3268_v36, %v1685_v33  ;;  %v1686_v45 = vmax.f32 %v1664_v37, 0.0 }
 0x3cd   : > { %v1962_v44 = vpop.f32.mrb[5].mxu1  ;;  %v1698_v49 = vmul.f32 %v3268_v36, %v1683_v39  ;;  %v1684_v54 = vmax.f32 %v1656_v42, 0.0  ;;  %v1971_v11 = vadd.f32 %v2448_v41, %v2377_v40 }
 0x3ce   : > { %v1963_v46 = vadd.f32 %v2377_v40, %v1962_v44  ;;  %v2449_v47 = vpop.f32.mrb[6].mxu1  ;;  %v1712_v48 = vsel %vm653_vm3, %v1700_v43, 0.0  ;;  %v1701_v63 = vmul.f32 %v3268_v36, %v1686_v45 }
 0x3cf   : > { %v1965_v50 = vpop.f32.mrb[7].mxu1  ;;  %v2432_v51 = vpop.f32.mrb[8].mxu0  ;;  %1713 = vadd.xlane.f32.xlu1 %v1712_v48  ;;  %v1706_v61 = vsel %vm653_vm3, %v1698_v49, 0.0  ;;  %v1699_v6 = vmul.f32 %v3268_v36, %v1684_v54  ;;  %v1983_v62 = vmax.f32 %v1971_v11, 0.0  ;;  %v1974_v27 = vadd.f32 %v2449_v47, %v2377_v40 }
 0x3d0   : > { %v1981_v53 = vmax.f32 %v1963_v46, 0.0  ;;  %v1966_v55 = vadd.f32 %v2377_v40, %v1965_v50  ;;  %v1668_v56 = vpop.f32.mrb[9].mxu0  ;;  %v1715_v8 = vsel %vm653_vm3, %v1701_v63, 0.0  ;;  %v1677_v33 = vadd.f32 %v2432_v51, %v3261_v29 }
 0x3d1   : > { %v1669_v57 = vadd.f32 %v3261_v29, %v1668_v56  ;;  %v2433_v58 = vpop.f32.mrb[10].mxu0  ;;  %v1709_v12 = vsel %vm653_vm3, %v1699_v6, 0.0  ;;  %v1984_v31 = vmax.f32 %v1974_v27, 0.0  ;;  %v1998_v35 = vmul.f32 %v3281_v52, %v1983_v62 }
 0x3d2   : > { %v1996_v59 = vmul.f32 %v3281_v52, %v1981_v53  ;;  %v1671_v60 = vpop.f32.mrb[11].mxu0  ;;  %v1982_v4 = vmax.f32 %v1966_v55, 0.0  ;;  %v1689_v42 = vmax.f32 %v1677_v33, 0.0  ;;  %v1680_v43 = vadd.f32 %v2433_v58, %v3261_v29 }
 0x3d3   : > { %v1687_v1 = vmax.f32 %v1669_v57, 0.0  ;;  %v1672_v2 = vadd.f32 %v3261_v29, %v1671_v60  ;;  %1707 = vadd.xlane.f32.xlu1 %v1706_v61  ;;  %v1999_v41 = vmul.f32 %v3281_v52, %v1984_v31  ;;  %v2029_v60 = vand.u32 127, %v513_v0 }
 0x3d4   : > { %v2012_v5 = vsel %vm653_vm3, %v1996_v59, 0.0  ;;  %v1997_v15 = vmul.f32 %v3281_v52, %v1982_v4  ;;  %v1690_v47 = vmax.f32 %v1680_v43, 0.0  ;;  %v1704_v49 = vmul.f32 %v3268_v36, %v1689_v42 }
 0x3d5   : > { %2013 = vadd.xlane.f32.xlu0 %v2012_v5  ;;  %v1688_v7 = vmax.f32 %v1672_v2, 0.0  ;;  %v1702_v9 = vmul.f32 %v3268_v36, %v1687_v1  ;;  %v2021_v46 = vsel %vm653_vm3, %v1999_v41, 0.0  ;;  %v2043_v1 = vsub.s32 %v2029_v60, %v3182_v3 }
 0x3d6   : > { %v2015_v23 = vsel %vm653_vm3, %v1997_v15, 0.0  ;;  %v1724_v50 = vsel %vm653_vm3, %v1704_v49, 0.0  ;;  %v1705_v51 = vmul.f32 %v3268_v36, %v1690_v47  ;;  %vm2032_vm11 = vcmp.ge.s32.totalorder %v2029_v60, %v3182_v3 }
 0x3d7   : > { %1716 = vadd.xlane.f32.xlu1 %v1715_v8  ;;  %v2444_v10 = vpop.f32.mrb[12].mxu0  ;;  %v1703_v17 = vmul.f32 %v3268_v36, %v1688_v7  ;;  %v1718_v24 = vsel %vm653_vm3, %v1702_v9, 0.0 }
 0x3d8   : > { %v1955_v13 = vadd.f32 %v2444_v10, %v2377_v40  ;;  %v1946_v14 = vpop.f32.mrb[13].mxu0  ;;  %v1727_v29 = vsel %vm653_vm3, %v1705_v51, 0.0 }
 0x3d9   : > { %1710 = vadd.xlane.f32.xlu0 %v1709_v12  ;;  %v2445_v16 = vpop.f32.mrb[14].mxu0  ;;  %v1947_v19 = vadd.f32 %v2377_v40, %v1946_v14  ;;  %v1721_v25 = vsel %vm653_vm3, %v1703_v17, 0.0 }
 0x3da   : > { %v1979_v18 = vmax.f32 %v1955_v13, 0.0  ;;  %v1958_v20 = vadd.f32 %v2445_v16, %v2377_v40  ;;  %v1949_v22 = vpop.f32.mrb[15].mxu0 }
 0x3db   : > { %1719 = vadd.xlane.f32.xlu1 %v1718_v24  ;;  %v1977_v26 = vmax.f32 %v1947_v19, 0.0  ;;  %v1950_v28 = vadd.f32 %v2377_v40, %v1949_v22  ;;  %v2018_v40 = vsel %vm653_vm3, %v1998_v35, 0.0 }
 0x3dc   : > { %v1980_v21 = vmax.f32 %v1958_v20, 0.0  ;;  %v1994_v32 = vmul.f32 %v3281_v52, %v1979_v18 }
 0x3dd   : > { %2016 = vadd.xlane.f32.xlu0 %v2015_v23  ;;  %v1978_v37 = vmax.f32 %v1950_v28, 0.0  ;;  %v1992_v39 = vmul.f32 %v3281_v52, %v1977_v26 }
 0x3de   : > { %v1995_v30 = vmul.f32 %v3281_v52, %v1980_v21  ;;  %v2006_v38 = vsel %vm653_vm3, %v1994_v32, 0.0 }
 0x3df   : > { %1722 = vadd.xlane.f32.xlu1 %v1721_v25  ;;  %v2000_v44 = vsel %vm653_vm3, %v1992_v39, 0.0  ;;  %v1993_v45 = vmul.f32 %v3281_v52, %v1978_v37 }
 0x3e0   : > { %v2009_v34 = vsel %vm653_vm3, %v1995_v30, 0.0 }
 0x3e1   : > { %2010 = vadd.xlane.f32.xlu0 %v2009_v34  ;;  %v2003_v48 = vsel %vm653_vm3, %v1993_v45, 0.0 }
 0x3e3   : > { %2007 = vadd.xlane.f32.xlu1 %v2006_v38 }
 0x3e5   : > { %2019 = vadd.xlane.f32.xlu0 %v2018_v40 }
 0x3e7   : > { %2001 = vadd.xlane.f32.xlu1 %v2000_v44 }
 0x3e9   : > { %2022 = vadd.xlane.f32.xlu0 %v2021_v46 }
 0x3eb   : > { %2004 = vadd.xlane.f32.xlu1 %v2003_v48 }
 0x3ef   : > { %1725 = vadd.xlane.f32.xlu1 %v1724_v50 }
 0x3f3   : > { %1728 = vadd.xlane.f32.xlu1 %v1727_v29 }
 0x45c   : > { %v1714_v53 = vpop.xlane.xlu1 %1713 }
 0x45d   : > { %v2052_v10 = vrot.slane %v1714_v53, %v2043_v1 }
 0x460   : > { %v1708_v52 = vpop.xlane.xlu1 %1707 }
 0x461   : > { %v2044_v4 = vrot.slane %v1708_v52, %v2043_v1 }
 0x462   : > { %v2014_v54 = vpop.xlane.xlu0 %2013 }
 0x463   : > { %v2115_v14 = vrot.slane %v2014_v54, %v2043_v1 }
 0x464   : > { %v1717_v55 = vpop.xlane.xlu1 %1716 }
 0x465   : > { %v2056_v0 = vrot.slane %v1717_v55, %v2043_v1 }
 0x466   : > { %v1711_v56 = vpop.xlane.xlu0 %1710 }
 0x467   : > { %v2048_v2 = vrot.slane %v1711_v56, %v2043_v1 }
 0x468   : > { %v1720_v57 = vpop.xlane.xlu1 %1719 }
 0x469   : > { %v2074_v7 = vsel %vm2073_vm4, %v2048_v2, %v2044_v4  ;;  %v2060_v16 = vrot.slane %v1720_v57, %v2043_v1 }
 0x46a   : > { %v2017_v59 = vpop.xlane.xlu0 %2016  ;;  %v2076_v15 = vsel %vm2075_vm5, %v2052_v10, %v2074_v7 }
 0x46b   : > { %v2119_v19 = vrot.slane %v2017_v59, %v2043_v1  ;;  %v2078_v23 = vsel %vm2077_vm6, %v2056_v0, %v2076_v15 }
 0x46c   : > { %v1723_v58 = vpop.xlane.xlu1 %1722  ;;  %v2080_v26 = vsel %vm2079_vm7, %v2060_v16, %v2078_v23 }
 0x46d   : > { %v2064_v20 = vrot.slane %v1723_v58, %v2043_v1 }
 0x46e   : > { %v2011_v63 = vpop.xlane.xlu0 %2010 }
 0x46f   : > { %v2111_v12 = vrot.slane %v2011_v63, %v2043_v1  ;;  %v2082_v32 = vsel %vm2081_vm9, %v2064_v20, %v2080_v26 }
 0x470   : > { %v2008_v61 = vpop.xlane.xlu1 %2007 }
 0x471   : > { %v2107_v11 = vrot.slane %v2008_v61, %v2043_v1 }
 0x472   : > { %v2020_v5 = vpop.xlane.xlu0 %2019 }
 0x473   : > { %v2123_v24 = vrot.slane %v2020_v5, %v2043_v1 }
 0x474   : > { %v2002_v36 = vpop.xlane.xlu1 %2001 }
 0x475   : > { %v2099_v8 = vrot.slane %v2002_v36, %v2043_v1 }
 0x476   : > { %v2023_v62 = vpop.xlane.xlu0 %2022 }
 0x477   : > { %v2127_v31 = vrot.slane %v2023_v62, %v2043_v1 }
 0x478   : > { %v2005_v6 = vpop.xlane.xlu1 %2004 }
 0x479   : > { %v2103_v9 = vrot.slane %v2005_v6, %v2043_v1 }
 0x47b   : > { %v2128_v13 = vsel %vm2073_vm4, %v2103_v9, %v2099_v8 }
 0x47c   : > { %v2129_v17 = vsel %vm2075_vm5, %v2107_v11, %v2128_v13  ;;  %v1726_v18 = vpop.xlane.xlu1 %1725 }
 0x47d   : > { %v2130_v22 = vsel %vm2077_vm6, %v2111_v12, %v2129_v17  ;;  %v2068_v21 = vrot.slane %v1726_v18, %v2043_v1 }
 0x47e   : > { %v2131_v27 = vsel %vm2079_vm7, %v2115_v14, %v2130_v22 }
 0x47f   : > { %v2132_v25 = vsel %vm2081_vm9, %v2119_v19, %v2131_v27  ;;  %v2084_v35 = vsel %vm2083_vm8, %v2068_v21, %v2082_v32 }
 0x480   : > { %v2133_v28 = vsel %vm2083_vm8, %v2123_v24, %v2132_v25  ;;  %v1729_v30 = vpop.xlane.xlu1 %1728 }
 0x481   : > { %v2072_v34 = vrot.slane %v1729_v30, %v2043_v1  ;;  %v2134_v37 = vsel %vm2085_vm10, %v2127_v31, %v2133_v28 }
 0x483   : > { %v2086_v33 = vsel %vm2085_vm10, %v2072_v34, %v2084_v35 }
 0x484   : > { %v2136_v38 = vsel %vm2032_vm11, %v2086_v33, %v2134_v37 }
 0x485   : > { %2138 = vst.msk [vmem:[%s504_s25] sm:$0xff] %vm2137_vm12, %v2136_v38 }
 0x486   : > { %2750 = shalt.err (!%p2747_p7)
}
 0x487   : > { %s2751_s24 = scalar_lea.hbm %s3330_s4, 128  ;;  %s2755_s26 = scalar_lea.hbm %s3430_s15, 256 }
 0x488   : > { %p2752_p12 = scmp.ne.s32.totalorder %s3330_s4, %s2751_s24  ;;  %p2756_p9 = scmp.lt.u32.totalorder %s3330_s4, %s3430_s15 }
 0x489   : > { %p2757_p0 = scmp.lt.u32.totalorder %s2755_s26, %s2751_s24  ;;  %p2759_p4 = scmp.lt.u32.totalorder %s2751_s24, %s3330_s4 }
 0x48a   : > { %p2753_p6 = pnand %p2752_p12, %p3058_p3 }
 0x48b   : > { %p2758_p2 = por %p2757_p0, %p2756_p9 }
 0x48c   : > { %p2754_p11 = pneg %p2753_p6 }
 0x48d   : > { %p2760_p8 = por %p2759_p4, %p2758_p2 }
 0x48f   : > { %p2761_p1 = pnand %p2760_p8, %p2754_p11 }
 0x491   : > { %2764 = shalt.err (!%p2761_p1)
}
 0x492   : > { %2477 = dma.vmem_to_hbm [thread:$0]  (%p3058_p3), %s3332_s20, 128, %s3330_s4, %s2140_s8  }
 0x493 PF: > { %s3431_s23 = sld [smem:[#allocation18_spill]]  ;;  %s3432_s25 = sld [smem:[#allocation20_spill]] }
 0x494   : > { %p3434_p10 = scmp.ge.s32.totalorder %s2831_s22, 2 }
 0x499   : > { %s2167_s17 = sand.u32 1, %s3431_s23   ;;  %p3433_p13 = scmp.ne.s32.totalorder %s3432_s25, 0 }
 0x49a   : > { %s2168_s16 = scalar_lea.sflag [#allocation5], %s2167_s17 }
 0x49b   : > { %p2497_p5 = pnand %p3434_p10, %p3433_p13 }
 0x49d   : > { %2806 = dma.done.wait (!%p2497_p5), %s2168_s16, 128  }
 0x49e   : > { %2808 = vsyncadd (!%p2497_p5), %s2168_s16, 4294967168  ;;  %s31_s22 = sadd.s32 1, %s2831_s22   ;;  %s3435_s17 = smov %s2815_s18 }
 0x49f   : > { %p28_p7 = scmp.ge.s32.totalorder %s31_s22, 4   ;;  %s3436_s18 = smov %s2819_s19 }
 0x4a0   : > { %s3437_s19 = smov %s3069_s11  ;;  %s3438_s20 = smov %s2827_s21 }
 0x4a1   : > { %s3439_s21 = smov %s3441_s2  ;;  %30 = sbr.rel (!%p28_p7) target bundleno = 16 (0x10), region = 161 }
 0x4a8   :  { %2173 = vsyncpa [#allocation4], 1 }
 0x4a9   :  { %2175 = vsyncpa [#allocation4 + $0x1], 1 }
 0x4aa   :  { %2176 = vsyncpa [#allocation7], 1 }
 0x4ab   :  { %2178 = vsyncpa [#allocation7 + $0x1], 1 }
 0x4ac   :  { %2179 = vsyncpa [#allocation10], 1 }
 0x4ad   :  { %2180 = vsyncpa [#allocation5], 1 }
 0x4ae   :  { %2182 = vsyncpa [#allocation5 + $0x1], 1 }

</bundles_post_ra>
